<compile_context>
chip_gen: v5e
topology: v5e:2x2
jax: 0.10.0
libtpu: 0.0.40
codegen_flags: <defaults>
</compile_context>

<pallas_src>
import jax
import jax.numpy as jnp
from jax.experimental import pallas as pl
from jax.experimental.pallas import tpu as pltpu


def memory_module_kernel(
    d_ref, q_ref, m_ref,
    w1_ref, wf_ref, wh_ref, wm_ref,
    vech_ref, vec2h_ref,
    next_mem_ref, hs_ref,
):
    _, S, H = d_ref.shape

    D = d_ref[0]            # (S, H)   facts for this batch element
    Q = q_ref[0]            # (1, H)
    M = m_ref[0]            # (1, H)

    # Small-vector slab: row0=b1, row1=bm, row2=W2 row, row3=b2 (broadcast).
    b1 = vech_ref[0:1, :]        # (1, H)
    bm = vech_ref[1:2, :]        # (1, H)
    w2row = vech_ref[2:3, :]     # (1, H)
    b2 = vech_ref[3:4, 0:1]      # (1, 1)
    bf = vec2h_ref[0:1, :]       # (1, 2H) = [br | bw]
    bh = vec2h_ref[1:2, :]       # (1, 2H) = [bur | bu]

    # ---------------- gate scores: softmax(W2(tanh(W1(z)))) -------------------
    # W1 is split into 4 HxH row-blocks; avoids lane-dim concatenation of the
    # four 32-lane-wide z pieces.
    DQ = D * Q
    DM = D * M
    AQ = jnp.abs(D - Q)
    AM = jnp.abs(D - M)
    pre = (
        jnp.dot(DQ, w1_ref[0 * H:1 * H, :], preferred_element_type=jnp.float32)
        + jnp.dot(DM, w1_ref[1 * H:2 * H, :], preferred_element_type=jnp.float32)
        + jnp.dot(AQ, w1_ref[2 * H:3 * H, :], preferred_element_type=jnp.float32)
        + jnp.dot(AM, w1_ref[3 * H:4 * H, :], preferred_element_type=jnp.float32)
        + b1
    )
    h1 = jnp.tanh(pre)                                          # (S, H)
    # (H -> 1) projection on the VPU instead of an N=1 MXU matmul.
    zz = jnp.sum(h1 * w2row, axis=-1, keepdims=True) + b2       # (S, 1)
    zmax = jnp.max(zz, axis=0, keepdims=True)
    e = jnp.exp(zz - zmax)
    G = e / jnp.sum(e, axis=0, keepdims=True)                   # softmax over S

    # ------------- AttnGRU over sentences (sequential, S static) --------------
    # Fact-side projections hoisted out of the loop: one (S,H)x(H,2H) matmul.
    fact_proj = jnp.dot(D, wf_ref[...], preferred_element_type=jnp.float32) + bf  # (S, 2H)
    Wh = wh_ref[...]                                             # (H, 2H) = [Ur | U]

    hi = jnp.zeros((1, H), dtype=jnp.float32)
    hs_list = []
    for s in range(S):                                           # unrolled static loop
        fp = fact_proj[s:s + 1, :]                               # (1, 2H)
        g = G[s:s + 1, :]                                        # (1, 1)
        hp = jnp.dot(hi, Wh, preferred_element_type=jnp.float32) + bh   # (1, 2H)
        r = jax.nn.sigmoid(fp[:, :H] + hp[:, :H])
        h_tilda = jnp.tanh(fp[:, H:] + r * hp[:, H:])
        hi = g * h_tilda + (1.0 - g) * hi
        hs_list.append(hi)
    hs = jnp.concatenate(hs_list, axis=0)                        # (S, H)
    hs_ref[...] = hs[None, :, :]                                 # single dense store
    C = hi                                                       # (1, H)

    # --------------------------- next memory update ----------------------------
    # Wm split into 3 HxH row-blocks; avoids concat([M, C, Q]) along lanes.
    # TODO(synk): nn.Dropout(0.2) is identity at inference; not implemented.
    nm = (
        jnp.dot(M, wm_ref[0 * H:1 * H, :], preferred_element_type=jnp.float32)
        + jnp.dot(C, wm_ref[1 * H:2 * H, :], preferred_element_type=jnp.float32)
        + jnp.dot(Q, wm_ref[2 * H:3 * H, :], preferred_element_type=jnp.float32)
        + bm
    )
    nm = jnp.maximum(nm, 0.0)
    next_mem_ref[...] = nm[None, :, :]                           # (1, 1, H)


def pack_params(params, H):
    """Fuse the 14 individual weights/biases into 6 slabs (host-side)."""
    Wf = jnp.concatenate([params["Wr"], params["W"]], axis=1)    # (H, 2H)
    Wh = jnp.concatenate([params["Ur"], params["U"]], axis=1)    # (H, 2H)
    w2row = params["W2"].reshape(1, H)                           # (H,1) -> (1,H)
    b2row = jnp.broadcast_to(params["b2"].reshape(1, 1), (1, H))
    vecH = jnp.concatenate(
        [params["b1"], params["bm"], w2row, b2row], axis=0)      # (4, H)
    vec2H = jnp.concatenate(
        [jnp.concatenate([params["br"], params["bw"]], axis=1),
         jnp.concatenate([params["bur"], params["bu"]], axis=1)], axis=0)  # (2, 2H)
    return {
        "W1": params["W1"],       # (4H, H)
        "Wf": Wf,                 # (H, 2H)
        "Wh": Wh,                 # (H, 2H)
        "Wm": params["Wm"],       # (3H, H)
        "vecH": vecH,             # (4, H)
        "vec2H": vec2H,           # (2, 2H)
    }


def memory_module(D, Q, prev_mem, packed):
    B, S, H = D.shape

    def const_spec(shape):
        return pl.BlockSpec(shape, lambda b, _s=shape: (0,) * len(_s))

    in_specs = [
        pl.BlockSpec((1, S, H), lambda b: (b, 0, 0)),   # D
        pl.BlockSpec((1, 1, H), lambda b: (b, 0, 0)),   # Q
        pl.BlockSpec((1, 1, H), lambda b: (b, 0, 0)),   # prev_mem
        const_spec((4 * H, H)),                          # W1 slab (resident)
        const_spec((H, 2 * H)),                          # [Wr | W]
        const_spec((H, 2 * H)),                          # [Ur | U]
        const_spec((3 * H, H)),                          # Wm slab
        const_spec((4, H)),                              # bias/vector slab
        const_spec((2, 2 * H)),                          # fused GRU biases
    ]
    out_specs = (
        pl.BlockSpec((1, 1, H), lambda b: (b, 0, 0)),   # next_mem
        pl.BlockSpec((1, S, H), lambda b: (b, 0, 0)),   # hs
    )

    next_mem, hs = pl.pallas_call(
        memory_module_kernel,
        out_shape=(
            jax.ShapeDtypeStruct((B, 1, H), jnp.float32),
            jax.ShapeDtypeStruct((B, S, H), jnp.float32),
        ),
        grid=(B,),
        in_specs=in_specs,
        out_specs=out_specs,
        compiler_params=pltpu.CompilerParams(
            dimension_semantics=("parallel",)),
    )(D, Q, prev_mem,
      packed["W1"], packed["Wf"], packed["Wh"], packed["Wm"],
      packed["vecH"], packed["vec2H"])
    return next_mem, hs


def _xavier_normal(key, fan_in, fan_out):
    std = (2.0 / (fan_in + fan_out)) ** 0.5
    return jax.random.normal(key, (fan_in, fan_out), jnp.float32) * std


def _bias(key, fan_in, fan_out):
    bound = 1.0 / (fan_in ** 0.5)
    return jax.random.uniform(key, (1, fan_out), jnp.float32, -bound, bound)


def init_params(key, H):
    ks = jax.random.split(key, 16)
    return {
        # MemoryModule linears (stored as (in, out) so y = x @ W + b)
        "W1": _xavier_normal(ks[0], 4 * H, H), "b1": _bias(ks[1], 4 * H, H),
        "W2": _xavier_normal(ks[2], H, 1),     "b2": _bias(ks[3], H, 1),
        "Wm": _xavier_normal(ks[4], 3 * H, H), "bm": _bias(ks[5], 3 * H, H),
        # AttnGRUCell linears
        "Wr": _xavier_normal(ks[6], H, H),  "br": _bias(ks[7], H, H),
        "Ur": _xavier_normal(ks[8], H, H),  "bur": _bias(ks[9], H, H),
        "W":  _xavier_normal(ks[10], H, H), "bw": _bias(ks[11], H, H),
        "U":  _xavier_normal(ks[12], H, H), "bu": _bias(ks[13], H, H),
    }


if __name__ == "__main__":
    B, S, H = 2, 8, 32
    key = jax.random.PRNGKey(0)
    k_d, k_q, k_m, k_p = jax.random.split(key, 4)

    D = jax.random.normal(k_d, (B, S, H), jnp.float32)         # facts / sentences
    Q = jax.random.normal(k_q, (B, 1, H), jnp.float32)         # question encoding
    prev_mem = jax.random.normal(k_m, (B, 1, H), jnp.float32)  # previous memory
    params = init_params(k_p, H)
    packed = pack_params(params, H)

    next_mem, hs = memory_module(D, Q, prev_mem, packed)
    jax.block_until_ready((next_mem, hs))

    assert next_mem.shape == (B, 1, H) and hs.shape == (B, S, H)
    assert bool(jnp.all(jnp.isfinite(next_mem))) and bool(jnp.all(jnp.isfinite(hs)))
    print("KERNEL_OK")
</pallas_src>

<mosaic_0001>
module attributes {stable_mosaic.version = 11 : i64} {
  func.func @memory_module_kernel(%arg0: i32, %arg1: memref<1x8x32xf32, #tpu.memory_space<vmem>>, %arg2: memref<1x1x32xf32, #tpu.memory_space<vmem>>, %arg3: memref<1x1x32xf32, #tpu.memory_space<vmem>>, %arg4: memref<128x32xf32, #tpu.memory_space<vmem>>, %arg5: memref<32x64xf32, #tpu.memory_space<vmem>>, %arg6: memref<32x64xf32, #tpu.memory_space<vmem>>, %arg7: memref<96x32xf32, #tpu.memory_space<vmem>>, %arg8: memref<4x32xf32, #tpu.memory_space<vmem>>, %arg9: memref<2x64xf32, #tpu.memory_space<vmem>>, %arg10: memref<1x1x32xf32, #tpu.memory_space<vmem>>, %arg11: memref<1x8x32xf32, #tpu.memory_space<vmem>>) attributes {dimension_semantics = [#tpu.dimension_semantics<parallel>], iteration_bounds = array<i64: 2>, scalar_prefetch = 0 : i64, scratch_operands = 0 : i64, tpu.core_type = #tpu.core_type<tc>, window_params = [{transform_indices = @transform_0, window_bounds = array<i64: 1, 8, 32>}, {transform_indices = @transform_1, window_bounds = array<i64: 1, 1, 32>}, {transform_indices = @transform_2, window_bounds = array<i64: 1, 1, 32>}, {pipeline_mode = #tpu.pipeline_mode<synchronous>, transform_indices = @transform_3, window_bounds = array<i64: 128, 32>}, {pipeline_mode = #tpu.pipeline_mode<synchronous>, transform_indices = @transform_4, window_bounds = array<i64: 32, 64>}, {pipeline_mode = #tpu.pipeline_mode<synchronous>, transform_indices = @transform_5, window_bounds = array<i64: 32, 64>}, {pipeline_mode = #tpu.pipeline_mode<synchronous>, transform_indices = @transform_6, window_bounds = array<i64: 96, 32>}, {pipeline_mode = #tpu.pipeline_mode<synchronous>, transform_indices = @transform_7, window_bounds = array<i64: 4, 32>}, {pipeline_mode = #tpu.pipeline_mode<synchronous>, transform_indices = @transform_8, window_bounds = array<i64: 2, 64>}, {transform_indices = @transform_9, window_bounds = array<i64: 1, 1, 32>}, {transform_indices = @transform_10, window_bounds = array<i64: 1, 8, 32>}]} {
    %c0 = arith.constant 0 : index
    %c0_0 = arith.constant 0 : index
    %c0_1 = arith.constant 0 : index
    %0 = vector.load %arg1[%c0, %c0_0, %c0_1] : memref<1x8x32xf32, #tpu.memory_space<vmem>>, vector<1x8x32xf32>
    %1 = vector.shape_cast %0 : vector<1x8x32xf32> to vector<8x32xf32>
    %c0_2 = arith.constant 0 : index
    %c0_3 = arith.constant 0 : index
    %c0_4 = arith.constant 0 : index
    %2 = vector.load %arg2[%c0_2, %c0_3, %c0_4] : memref<1x1x32xf32, #tpu.memory_space<vmem>>, vector<1x1x32xf32>
    %3 = vector.shape_cast %2 : vector<1x1x32xf32> to vector<1x32xf32>
    %c0_5 = arith.constant 0 : index
    %c0_6 = arith.constant 0 : index
    %c0_7 = arith.constant 0 : index
    %4 = vector.load %arg3[%c0_5, %c0_6, %c0_7] : memref<1x1x32xf32, #tpu.memory_space<vmem>>, vector<1x1x32xf32>
    %5 = vector.shape_cast %4 : vector<1x1x32xf32> to vector<1x32xf32>
    %c0_8 = arith.constant 0 : index
    %c0_9 = arith.constant 0 : index
    %6 = vector.load %arg8[%c0_8, %c0_9] : memref<4x32xf32, #tpu.memory_space<vmem>>, vector<1x32xf32>
    %c1 = arith.constant 1 : index
    %c0_10 = arith.constant 0 : index
    %7 = vector.load %arg8[%c1, %c0_10] : memref<4x32xf32, #tpu.memory_space<vmem>>, vector<1x32xf32>
    %c2 = arith.constant 2 : index
    %c0_11 = arith.constant 0 : index
    %8 = vector.load %arg8[%c2, %c0_11] : memref<4x32xf32, #tpu.memory_space<vmem>>, vector<1x32xf32>
    %c3 = arith.constant 3 : index
    %c0_12 = arith.constant 0 : index
    %9 = vector.load %arg8[%c3, %c0_12] : memref<4x32xf32, #tpu.memory_space<vmem>>, vector<1x1xf32>
    %c0_13 = arith.constant 0 : index
    %c0_14 = arith.constant 0 : index
    %10 = vector.load %arg9[%c0_13, %c0_14] : memref<2x64xf32, #tpu.memory_space<vmem>>, vector<1x64xf32>
    %c1_15 = arith.constant 1 : index
    %c0_16 = arith.constant 0 : index
    %11 = vector.load %arg9[%c1_15, %c0_16] : memref<2x64xf32, #tpu.memory_space<vmem>>, vector<1x64xf32>
    %12 = vector.broadcast %3 : vector<1x32xf32> to vector<8x32xf32>
    %13 = arith.mulf %1, %12 : vector<8x32xf32>
    %14 = vector.broadcast %5 : vector<1x32xf32> to vector<8x32xf32>
    %15 = arith.mulf %1, %14 : vector<8x32xf32>
    %16 = vector.broadcast %3 : vector<1x32xf32> to vector<8x32xf32>
    %17 = arith.subf %1, %16 : vector<8x32xf32>
    %18 = math.absf %17 : vector<8x32xf32>
    %19 = vector.broadcast %5 : vector<1x32xf32> to vector<8x32xf32>
    %20 = arith.subf %1, %19 : vector<8x32xf32>
    %21 = math.absf %20 : vector<8x32xf32>
    %c0_17 = arith.constant 0 : index
    %c0_18 = arith.constant 0 : index
    %22 = vector.load %arg4[%c0_17, %c0_18] : memref<128x32xf32, #tpu.memory_space<vmem>>, vector<32x32xf32>
    %cst = arith.constant dense<0.000000e+00> : vector<8x32xf32>
    %23 = tpu.matmul %13, %22, %cst {dimension_numbers = #tpu.dot_dimension_numbers<[1], [0], [0], [1], [0, 0, 1, 1], [], []>} : vector<8x32xf32>, vector<32x32xf32>, vector<8x32xf32> -> vector<8x32xf32>
    %c32 = arith.constant 32 : index
    %c0_19 = arith.constant 0 : index
    %24 = vector.load %arg4[%c32, %c0_19] : memref<128x32xf32, #tpu.memory_space<vmem>>, vector<32x32xf32>
    %cst_20 = arith.constant dense<0.000000e+00> : vector<8x32xf32>
    %25 = tpu.matmul %15, %24, %cst_20 {dimension_numbers = #tpu.dot_dimension_numbers<[1], [0], [0], [1], [0, 0, 1, 1], [], []>} : vector<8x32xf32>, vector<32x32xf32>, vector<8x32xf32> -> vector<8x32xf32>
    %26 = arith.addf %23, %25 : vector<8x32xf32>
    %c64 = arith.constant 64 : index
    %c0_21 = arith.constant 0 : index
    %27 = vector.load %arg4[%c64, %c0_21] : memref<128x32xf32, #tpu.memory_space<vmem>>, vector<32x32xf32>
    %cst_22 = arith.constant dense<0.000000e+00> : vector<8x32xf32>
    %28 = tpu.matmul %18, %27, %cst_22 {dimension_numbers = #tpu.dot_dimension_numbers<[1], [0], [0], [1], [0, 0, 1, 1], [], []>} : vector<8x32xf32>, vector<32x32xf32>, vector<8x32xf32> -> vector<8x32xf32>
    %29 = arith.addf %26, %28 : vector<8x32xf32>
    %c96 = arith.constant 96 : index
    %c0_23 = arith.constant 0 : index
    %30 = vector.load %arg4[%c96, %c0_23] : memref<128x32xf32, #tpu.memory_space<vmem>>, vector<32x32xf32>
    %cst_24 = arith.constant dense<0.000000e+00> : vector<8x32xf32>
    %31 = tpu.matmul %21, %30, %cst_24 {dimension_numbers = #tpu.dot_dimension_numbers<[1], [0], [0], [1], [0, 0, 1, 1], [], []>} : vector<8x32xf32>, vector<32x32xf32>, vector<8x32xf32> -> vector<8x32xf32>
    %32 = arith.addf %29, %31 : vector<8x32xf32>
    %33 = vector.broadcast %6 : vector<1x32xf32> to vector<8x32xf32>
    %34 = arith.addf %32, %33 : vector<8x32xf32>
    %35 = math.tanh %34 : vector<8x32xf32>
    %36 = vector.broadcast %8 : vector<1x32xf32> to vector<8x32xf32>
    %37 = arith.mulf %35, %36 : vector<8x32xf32>
    %cst_25 = arith.constant dense<0.000000e+00> : vector<8xf32>
    %38 = vector.multi_reduction <add>, %37, %cst_25 [1] : vector<8x32xf32> to vector<8xf32>
    %39 = vector.shape_cast %38 : vector<8xf32> to vector<8x1xf32>
    %40 = vector.broadcast %9 : vector<1x1xf32> to vector<8x1xf32>
    %41 = arith.addf %39, %40 : vector<8x1xf32>
    %cst_26 = arith.constant dense<0xFF800000> : vector<1xf32>
    %42 = vector.multi_reduction <maximumf>, %41, %cst_26 [0] : vector<8x1xf32> to vector<1xf32>
    %43 = vector.shape_cast %42 : vector<1xf32> to vector<1x1xf32>
    %44 = vector.broadcast %43 : vector<1x1xf32> to vector<8x1xf32>
    %45 = arith.subf %41, %44 : vector<8x1xf32>
    %46 = math.exp %45 : vector<8x1xf32>
    %cst_27 = arith.constant dense<0.000000e+00> : vector<1xf32>
    %47 = vector.multi_reduction <add>, %46, %cst_27 [0] : vector<8x1xf32> to vector<1xf32>
    %48 = vector.shape_cast %47 : vector<1xf32> to vector<1x1xf32>
    %49 = vector.broadcast %48 : vector<1x1xf32> to vector<8x1xf32>
    %50 = arith.divf %46, %49 : vector<8x1xf32>
    %c0_28 = arith.constant 0 : index
    %c0_29 = arith.constant 0 : index
    %51 = vector.load %arg5[%c0_28, %c0_29] : memref<32x64xf32, #tpu.memory_space<vmem>>, vector<32x64xf32>
    %cst_30 = arith.constant dense<0.000000e+00> : vector<8x64xf32>
    %52 = tpu.matmul %1, %51, %cst_30 {dimension_numbers = #tpu.dot_dimension_numbers<[1], [0], [0], [1], [0, 0, 1, 1], [], []>} : vector<8x32xf32>, vector<32x64xf32>, vector<8x64xf32> -> vector<8x64xf32>
    %53 = vector.broadcast %10 : vector<1x64xf32> to vector<8x64xf32>
    %54 = arith.addf %52, %53 : vector<8x64xf32>
    %c0_31 = arith.constant 0 : index
    %c0_32 = arith.constant 0 : index
    %55 = vector.load %arg6[%c0_31, %c0_32] : memref<32x64xf32, #tpu.memory_space<vmem>>, vector<32x64xf32>
    %cst_33 = arith.constant 0.000000e+00 : f32
    %56 = vector.broadcast %cst_33 : f32 to vector<1x32xf32>
    %57 = vector.extract_strided_slice %54 {offsets = [0, 0], sizes = [1, 64], strides = [1, 1]} : vector<8x64xf32> to vector<1x64xf32>
    %58 = vector.extract_strided_slice %50 {offsets = [0, 0], sizes = [1, 1], strides = [1, 1]} : vector<8x1xf32> to vector<1x1xf32>
    %cst_34 = arith.constant dense<0.000000e+00> : vector<1x64xf32>
    %59 = tpu.matmul %56, %55, %cst_34 {dimension_numbers = #tpu.dot_dimension_numbers<[1], [0], [0], [1], [0, 0, 1, 1], [], []>} : vector<1x32xf32>, vector<32x64xf32>, vector<1x64xf32> -> vector<1x64xf32>
    %60 = arith.addf %59, %11 : vector<1x64xf32>
    %61 = vector.extract_strided_slice %57 {offsets = [0, 0], sizes = [1, 32], strides = [1, 1]} : vector<1x64xf32> to vector<1x32xf32>
    %62 = vector.extract_strided_slice %60 {offsets = [0, 0], sizes = [1, 32], strides = [1, 1]} : vector<1x64xf32> to vector<1x32xf32>
    %63 = arith.addf %61, %62 : vector<1x32xf32>
    %64 = arith.negf %63 : vector<1x32xf32>
    %65 = math.exp %64 : vector<1x32xf32>
    %cst_35 = arith.constant 1.000000e+00 : f32
    %66 = vector.broadcast %cst_35 : f32 to vector<1x32xf32>
    %67 = arith.addf %66, %65 : vector<1x32xf32>
    %68 = arith.divf %66, %67 : vector<1x32xf32>
    %69 = vector.extract_strided_slice %57 {offsets = [0, 32], sizes = [1, 32], strides = [1, 1]} : vector<1x64xf32> to vector<1x32xf32>
    %70 = vector.extract_strided_slice %60 {offsets = [0, 32], sizes = [1, 32], strides = [1, 1]} : vector<1x64xf32> to vector<1x32xf32>
    %71 = arith.mulf %68, %70 : vector<1x32xf32>
    %72 = arith.addf %69, %71 : vector<1x32xf32>
    %73 = math.tanh %72 : vector<1x32xf32>
    %74 = vector.broadcast %58 : vector<1x1xf32> to vector<1x32xf32>
    %75 = arith.mulf %74, %73 : vector<1x32xf32>
    %cst_36 = arith.constant 1.000000e+00 : f32
    %76 = vector.broadcast %cst_36 : f32 to vector<1x1xf32>
    %77 = arith.subf %76, %58 : vector<1x1xf32>
    %78 = vector.broadcast %77 : vector<1x1xf32> to vector<1x32xf32>
    %79 = arith.mulf %78, %56 : vector<1x32xf32>
    %80 = arith.addf %75, %79 : vector<1x32xf32>
    %81 = vector.extract_strided_slice %54 {offsets = [1, 0], sizes = [1, 64], strides = [1, 1]} : vector<8x64xf32> to vector<1x64xf32>
    %82 = vector.extract_strided_slice %50 {offsets = [1, 0], sizes = [1, 1], strides = [1, 1]} : vector<8x1xf32> to vector<1x1xf32>
    %cst_37 = arith.constant dense<0.000000e+00> : vector<1x64xf32>
    %83 = tpu.matmul %80, %55, %cst_37 {dimension_numbers = #tpu.dot_dimension_numbers<[1], [0], [0], [1], [0, 0, 1, 1], [], []>} : vector<1x32xf32>, vector<32x64xf32>, vector<1x64xf32> -> vector<1x64xf32>
    %84 = arith.addf %83, %11 : vector<1x64xf32>
    %85 = vector.extract_strided_slice %81 {offsets = [0, 0], sizes = [1, 32], strides = [1, 1]} : vector<1x64xf32> to vector<1x32xf32>
    %86 = vector.extract_strided_slice %84 {offsets = [0, 0], sizes = [1, 32], strides = [1, 1]} : vector<1x64xf32> to vector<1x32xf32>
    %87 = arith.addf %85, %86 : vector<1x32xf32>
    %88 = arith.negf %87 : vector<1x32xf32>
    %89 = math.exp %88 : vector<1x32xf32>
    %cst_38 = arith.constant 1.000000e+00 : f32
    %90 = vector.broadcast %cst_38 : f32 to vector<1x32xf32>
    %91 = arith.addf %90, %89 : vector<1x32xf32>
    %92 = arith.divf %90, %91 : vector<1x32xf32>
    %93 = vector.extract_strided_slice %81 {offsets = [0, 32], sizes = [1, 32], strides = [1, 1]} : vector<1x64xf32> to vector<1x32xf32>
    %94 = vector.extract_strided_slice %84 {offsets = [0, 32], sizes = [1, 32], strides = [1, 1]} : vector<1x64xf32> to vector<1x32xf32>
    %95 = arith.mulf %92, %94 : vector<1x32xf32>
    %96 = arith.addf %93, %95 : vector<1x32xf32>
    %97 = math.tanh %96 : vector<1x32xf32>
    %98 = vector.broadcast %82 : vector<1x1xf32> to vector<1x32xf32>
    %99 = arith.mulf %98, %97 : vector<1x32xf32>
    %cst_39 = arith.constant 1.000000e+00 : f32
    %100 = vector.broadcast %cst_39 : f32 to vector<1x1xf32>
    %101 = arith.subf %100, %82 : vector<1x1xf32>
    %102 = vector.broadcast %101 : vector<1x1xf32> to vector<1x32xf32>
    %103 = arith.mulf %102, %80 : vector<1x32xf32>
    %104 = arith.addf %99, %103 : vector<1x32xf32>
    %105 = vector.extract_strided_slice %54 {offsets = [2, 0], sizes = [1, 64], strides = [1, 1]} : vector<8x64xf32> to vector<1x64xf32>
    %106 = vector.extract_strided_slice %50 {offsets = [2, 0], sizes = [1, 1], strides = [1, 1]} : vector<8x1xf32> to vector<1x1xf32>
    %cst_40 = arith.constant dense<0.000000e+00> : vector<1x64xf32>
    %107 = tpu.matmul %104, %55, %cst_40 {dimension_numbers = #tpu.dot_dimension_numbers<[1], [0], [0], [1], [0, 0, 1, 1], [], []>} : vector<1x32xf32>, vector<32x64xf32>, vector<1x64xf32> -> vector<1x64xf32>
    %108 = arith.addf %107, %11 : vector<1x64xf32>
    %109 = vector.extract_strided_slice %105 {offsets = [0, 0], sizes = [1, 32], strides = [1, 1]} : vector<1x64xf32> to vector<1x32xf32>
    %110 = vector.extract_strided_slice %108 {offsets = [0, 0], sizes = [1, 32], strides = [1, 1]} : vector<1x64xf32> to vector<1x32xf32>
    %111 = arith.addf %109, %110 : vector<1x32xf32>
    %112 = arith.negf %111 : vector<1x32xf32>
    %113 = math.exp %112 : vector<1x32xf32>
    %cst_41 = arith.constant 1.000000e+00 : f32
    %114 = vector.broadcast %cst_41 : f32 to vector<1x32xf32>
    %115 = arith.addf %114, %113 : vector<1x32xf32>
    %116 = arith.divf %114, %115 : vector<1x32xf32>
    %117 = vector.extract_strided_slice %105 {offsets = [0, 32], sizes = [1, 32], strides = [1, 1]} : vector<1x64xf32> to vector<1x32xf32>
    %118 = vector.extract_strided_slice %108 {offsets = [0, 32], sizes = [1, 32], strides = [1, 1]} : vector<1x64xf32> to vector<1x32xf32>
    %119 = arith.mulf %116, %118 : vector<1x32xf32>
    %120 = arith.addf %117, %119 : vector<1x32xf32>
    %121 = math.tanh %120 : vector<1x32xf32>
    %122 = vector.broadcast %106 : vector<1x1xf32> to vector<1x32xf32>
    %123 = arith.mulf %122, %121 : vector<1x32xf32>
    %cst_42 = arith.constant 1.000000e+00 : f32
    %124 = vector.broadcast %cst_42 : f32 to vector<1x1xf32>
    %125 = arith.subf %124, %106 : vector<1x1xf32>
    %126 = vector.broadcast %125 : vector<1x1xf32> to vector<1x32xf32>
    %127 = arith.mulf %126, %104 : vector<1x32xf32>
    %128 = arith.addf %123, %127 : vector<1x32xf32>
    %129 = vector.extract_strided_slice %54 {offsets = [3, 0], sizes = [1, 64], strides = [1, 1]} : vector<8x64xf32> to vector<1x64xf32>
    %130 = vector.extract_strided_slice %50 {offsets = [3, 0], sizes = [1, 1], strides = [1, 1]} : vector<8x1xf32> to vector<1x1xf32>
    %cst_43 = arith.constant dense<0.000000e+00> : vector<1x64xf32>
    %131 = tpu.matmul %128, %55, %cst_43 {dimension_numbers = #tpu.dot_dimension_numbers<[1], [0], [0], [1], [0, 0, 1, 1], [], []>} : vector<1x32xf32>, vector<32x64xf32>, vector<1x64xf32> -> vector<1x64xf32>
    %132 = arith.addf %131, %11 : vector<1x64xf32>
    %133 = vector.extract_strided_slice %129 {offsets = [0, 0], sizes = [1, 32], strides = [1, 1]} : vector<1x64xf32> to vector<1x32xf32>
    %134 = vector.extract_strided_slice %132 {offsets = [0, 0], sizes = [1, 32], strides = [1, 1]} : vector<1x64xf32> to vector<1x32xf32>
    %135 = arith.addf %133, %134 : vector<1x32xf32>
    %136 = arith.negf %135 : vector<1x32xf32>
    %137 = math.exp %136 : vector<1x32xf32>
    %cst_44 = arith.constant 1.000000e+00 : f32
    %138 = vector.broadcast %cst_44 : f32 to vector<1x32xf32>
    %139 = arith.addf %138, %137 : vector<1x32xf32>
    %140 = arith.divf %138, %139 : vector<1x32xf32>
    %141 = vector.extract_strided_slice %129 {offsets = [0, 32], sizes = [1, 32], strides = [1, 1]} : vector<1x64xf32> to vector<1x32xf32>
    %142 = vector.extract_strided_slice %132 {offsets = [0, 32], sizes = [1, 32], strides = [1, 1]} : vector<1x64xf32> to vector<1x32xf32>
    %143 = arith.mulf %140, %142 : vector<1x32xf32>
    %144 = arith.addf %141, %143 : vector<1x32xf32>
    %145 = math.tanh %144 : vector<1x32xf32>
    %146 = vector.broadcast %130 : vector<1x1xf32> to vector<1x32xf32>
    %147 = arith.mulf %146, %145 : vector<1x32xf32>
    %cst_45 = arith.constant 1.000000e+00 : f32
    %148 = vector.broadcast %cst_45 : f32 to vector<1x1xf32>
    %149 = arith.subf %148, %130 : vector<1x1xf32>
    %150 = vector.broadcast %149 : vector<1x1xf32> to vector<1x32xf32>
    %151 = arith.mulf %150, %128 : vector<1x32xf32>
    %152 = arith.addf %147, %151 : vector<1x32xf32>
    %153 = vector.extract_strided_slice %54 {offsets = [4, 0], sizes = [1, 64], strides = [1, 1]} : vector<8x64xf32> to vector<1x64xf32>
    %154 = vector.extract_strided_slice %50 {offsets = [4, 0], sizes = [1, 1], strides = [1, 1]} : vector<8x1xf32> to vector<1x1xf32>
    %cst_46 = arith.constant dense<0.000000e+00> : vector<1x64xf32>
    %155 = tpu.matmul %152, %55, %cst_46 {dimension_numbers = #tpu.dot_dimension_numbers<[1], [0], [0], [1], [0, 0, 1, 1], [], []>} : vector<1x32xf32>, vector<32x64xf32>, vector<1x64xf32> -> vector<1x64xf32>
    %156 = arith.addf %155, %11 : vector<1x64xf32>
    %157 = vector.extract_strided_slice %153 {offsets = [0, 0], sizes = [1, 32], strides = [1, 1]} : vector<1x64xf32> to vector<1x32xf32>
    %158 = vector.extract_strided_slice %156 {offsets = [0, 0], sizes = [1, 32], strides = [1, 1]} : vector<1x64xf32> to vector<1x32xf32>
    %159 = arith.addf %157, %158 : vector<1x32xf32>
    %160 = arith.negf %159 : vector<1x32xf32>
    %161 = math.exp %160 : vector<1x32xf32>
    %cst_47 = arith.constant 1.000000e+00 : f32
    %162 = vector.broadcast %cst_47 : f32 to vector<1x32xf32>
    %163 = arith.addf %162, %161 : vector<1x32xf32>
    %164 = arith.divf %162, %163 : vector<1x32xf32>
    %165 = vector.extract_strided_slice %153 {offsets = [0, 32], sizes = [1, 32], strides = [1, 1]} : vector<1x64xf32> to vector<1x32xf32>
    %166 = vector.extract_strided_slice %156 {offsets = [0, 32], sizes = [1, 32], strides = [1, 1]} : vector<1x64xf32> to vector<1x32xf32>
    %167 = arith.mulf %164, %166 : vector<1x32xf32>
    %168 = arith.addf %165, %167 : vector<1x32xf32>
    %169 = math.tanh %168 : vector<1x32xf32>
    %170 = vector.broadcast %154 : vector<1x1xf32> to vector<1x32xf32>
    %171 = arith.mulf %170, %169 : vector<1x32xf32>
    %cst_48 = arith.constant 1.000000e+00 : f32
    %172 = vector.broadcast %cst_48 : f32 to vector<1x1xf32>
    %173 = arith.subf %172, %154 : vector<1x1xf32>
    %174 = vector.broadcast %173 : vector<1x1xf32> to vector<1x32xf32>
    %175 = arith.mulf %174, %152 : vector<1x32xf32>
    %176 = arith.addf %171, %175 : vector<1x32xf32>
    %177 = vector.extract_strided_slice %54 {offsets = [5, 0], sizes = [1, 64], strides = [1, 1]} : vector<8x64xf32> to vector<1x64xf32>
    %178 = vector.extract_strided_slice %50 {offsets = [5, 0], sizes = [1, 1], strides = [1, 1]} : vector<8x1xf32> to vector<1x1xf32>
    %cst_49 = arith.constant dense<0.000000e+00> : vector<1x64xf32>
    %179 = tpu.matmul %176, %55, %cst_49 {dimension_numbers = #tpu.dot_dimension_numbers<[1], [0], [0], [1], [0, 0, 1, 1], [], []>} : vector<1x32xf32>, vector<32x64xf32>, vector<1x64xf32> -> vector<1x64xf32>
    %180 = arith.addf %179, %11 : vector<1x64xf32>
    %181 = vector.extract_strided_slice %177 {offsets = [0, 0], sizes = [1, 32], strides = [1, 1]} : vector<1x64xf32> to vector<1x32xf32>
    %182 = vector.extract_strided_slice %180 {offsets = [0, 0], sizes = [1, 32], strides = [1, 1]} : vector<1x64xf32> to vector<1x32xf32>
    %183 = arith.addf %181, %182 : vector<1x32xf32>
    %184 = arith.negf %183 : vector<1x32xf32>
    %185 = math.exp %184 : vector<1x32xf32>
    %cst_50 = arith.constant 1.000000e+00 : f32
    %186 = vector.broadcast %cst_50 : f32 to vector<1x32xf32>
    %187 = arith.addf %186, %185 : vector<1x32xf32>
    %188 = arith.divf %186, %187 : vector<1x32xf32>
    %189 = vector.extract_strided_slice %177 {offsets = [0, 32], sizes = [1, 32], strides = [1, 1]} : vector<1x64xf32> to vector<1x32xf32>
    %190 = vector.extract_strided_slice %180 {offsets = [0, 32], sizes = [1, 32], strides = [1, 1]} : vector<1x64xf32> to vector<1x32xf32>
    %191 = arith.mulf %188, %190 : vector<1x32xf32>
    %192 = arith.addf %189, %191 : vector<1x32xf32>
    %193 = math.tanh %192 : vector<1x32xf32>
    %194 = vector.broadcast %178 : vector<1x1xf32> to vector<1x32xf32>
    %195 = arith.mulf %194, %193 : vector<1x32xf32>
    %cst_51 = arith.constant 1.000000e+00 : f32
    %196 = vector.broadcast %cst_51 : f32 to vector<1x1xf32>
    %197 = arith.subf %196, %178 : vector<1x1xf32>
    %198 = vector.broadcast %197 : vector<1x1xf32> to vector<1x32xf32>
    %199 = arith.mulf %198, %176 : vector<1x32xf32>
    %200 = arith.addf %195, %199 : vector<1x32xf32>
    %201 = vector.extract_strided_slice %54 {offsets = [6, 0], sizes = [1, 64], strides = [1, 1]} : vector<8x64xf32> to vector<1x64xf32>
    %202 = vector.extract_strided_slice %50 {offsets = [6, 0], sizes = [1, 1], strides = [1, 1]} : vector<8x1xf32> to vector<1x1xf32>
    %cst_52 = arith.constant dense<0.000000e+00> : vector<1x64xf32>
    %203 = tpu.matmul %200, %55, %cst_52 {dimension_numbers = #tpu.dot_dimension_numbers<[1], [0], [0], [1], [0, 0, 1, 1], [], []>} : vector<1x32xf32>, vector<32x64xf32>, vector<1x64xf32> -> vector<1x64xf32>
    %204 = arith.addf %203, %11 : vector<1x64xf32>
    %205 = vector.extract_strided_slice %201 {offsets = [0, 0], sizes = [1, 32], strides = [1, 1]} : vector<1x64xf32> to vector<1x32xf32>
    %206 = vector.extract_strided_slice %204 {offsets = [0, 0], sizes = [1, 32], strides = [1, 1]} : vector<1x64xf32> to vector<1x32xf32>
    %207 = arith.addf %205, %206 : vector<1x32xf32>
    %208 = arith.negf %207 : vector<1x32xf32>
    %209 = math.exp %208 : vector<1x32xf32>
    %cst_53 = arith.constant 1.000000e+00 : f32
    %210 = vector.broadcast %cst_53 : f32 to vector<1x32xf32>
    %211 = arith.addf %210, %209 : vector<1x32xf32>
    %212 = arith.divf %210, %211 : vector<1x32xf32>
    %213 = vector.extract_strided_slice %201 {offsets = [0, 32], sizes = [1, 32], strides = [1, 1]} : vector<1x64xf32> to vector<1x32xf32>
    %214 = vector.extract_strided_slice %204 {offsets = [0, 32], sizes = [1, 32], strides = [1, 1]} : vector<1x64xf32> to vector<1x32xf32>
    %215 = arith.mulf %212, %214 : vector<1x32xf32>
    %216 = arith.addf %213, %215 : vector<1x32xf32>
    %217 = math.tanh %216 : vector<1x32xf32>
    %218 = vector.broadcast %202 : vector<1x1xf32> to vector<1x32xf32>
    %219 = arith.mulf %218, %217 : vector<1x32xf32>
    %cst_54 = arith.constant 1.000000e+00 : f32
    %220 = vector.broadcast %cst_54 : f32 to vector<1x1xf32>
    %221 = arith.subf %220, %202 : vector<1x1xf32>
    %222 = vector.broadcast %221 : vector<1x1xf32> to vector<1x32xf32>
    %223 = arith.mulf %222, %200 : vector<1x32xf32>
    %224 = arith.addf %219, %223 : vector<1x32xf32>
    %225 = vector.extract_strided_slice %54 {offsets = [7, 0], sizes = [1, 64], strides = [1, 1]} : vector<8x64xf32> to vector<1x64xf32>
    %226 = vector.extract_strided_slice %50 {offsets = [7, 0], sizes = [1, 1], strides = [1, 1]} : vector<8x1xf32> to vector<1x1xf32>
    %cst_55 = arith.constant dense<0.000000e+00> : vector<1x64xf32>
    %227 = tpu.matmul %224, %55, %cst_55 {dimension_numbers = #tpu.dot_dimension_numbers<[1], [0], [0], [1], [0, 0, 1, 1], [], []>} : vector<1x32xf32>, vector<32x64xf32>, vector<1x64xf32> -> vector<1x64xf32>
    %228 = arith.addf %227, %11 : vector<1x64xf32>
    %229 = vector.extract_strided_slice %225 {offsets = [0, 0], sizes = [1, 32], strides = [1, 1]} : vector<1x64xf32> to vector<1x32xf32>
    %230 = vector.extract_strided_slice %228 {offsets = [0, 0], sizes = [1, 32], strides = [1, 1]} : vector<1x64xf32> to vector<1x32xf32>
    %231 = arith.addf %229, %230 : vector<1x32xf32>
    %232 = arith.negf %231 : vector<1x32xf32>
    %233 = math.exp %232 : vector<1x32xf32>
    %cst_56 = arith.constant 1.000000e+00 : f32
    %234 = vector.broadcast %cst_56 : f32 to vector<1x32xf32>
    %235 = arith.addf %234, %233 : vector<1x32xf32>
    %236 = arith.divf %234, %235 : vector<1x32xf32>
    %237 = vector.extract_strided_slice %225 {offsets = [0, 32], sizes = [1, 32], strides = [1, 1]} : vector<1x64xf32> to vector<1x32xf32>
    %238 = vector.extract_strided_slice %228 {offsets = [0, 32], sizes = [1, 32], strides = [1, 1]} : vector<1x64xf32> to vector<1x32xf32>
    %239 = arith.mulf %236, %238 : vector<1x32xf32>
    %240 = arith.addf %237, %239 : vector<1x32xf32>
    %241 = math.tanh %240 : vector<1x32xf32>
    %242 = vector.broadcast %226 : vector<1x1xf32> to vector<1x32xf32>
    %243 = arith.mulf %242, %241 : vector<1x32xf32>
    %cst_57 = arith.constant 1.000000e+00 : f32
    %244 = vector.broadcast %cst_57 : f32 to vector<1x1xf32>
    %245 = arith.subf %244, %226 : vector<1x1xf32>
    %246 = vector.broadcast %245 : vector<1x1xf32> to vector<1x32xf32>
    %247 = arith.mulf %246, %224 : vector<1x32xf32>
    %248 = arith.addf %243, %247 : vector<1x32xf32>
    %249 = tpu.concatenate %80, %104, %128, %152, %176, %200, %224, %248 in 0 : vector<1x32xf32>, vector<1x32xf32>, vector<1x32xf32>, vector<1x32xf32>, vector<1x32xf32>, vector<1x32xf32>, vector<1x32xf32>, vector<1x32xf32> -> vector<8x32xf32>
    %250 = vector.shape_cast %249 : vector<8x32xf32> to vector<1x8x32xf32>
    %c0_58 = arith.constant 0 : index
    %c0_59 = arith.constant 0 : index
    %c0_60 = arith.constant 0 : index
    %251 = vector.load %arg11[%c0_58, %c0_59, %c0_60] : memref<1x8x32xf32, #tpu.memory_space<vmem>>, vector<1x8x32xf32>
    tpu.vector_store %arg11[%c0_58, %c0_59, %c0_60], %250 {strides = array<i32>} : memref<1x8x32xf32, #tpu.memory_space<vmem>>, vector<1x8x32xf32>,
    %c0_61 = arith.constant 0 : index
    %c0_62 = arith.constant 0 : index
    %252 = vector.load %arg7[%c0_61, %c0_62] : memref<96x32xf32, #tpu.memory_space<vmem>>, vector<32x32xf32>
    %cst_63 = arith.constant dense<0.000000e+00> : vector<1x32xf32>
    %253 = tpu.matmul %5, %252, %cst_63 {dimension_numbers = #tpu.dot_dimension_numbers<[1], [0], [0], [1], [0, 0, 1, 1], [], []>} : vector<1x32xf32>, vector<32x32xf32>, vector<1x32xf32> -> vector<1x32xf32>
    %c32_64 = arith.constant 32 : index
    %c0_65 = arith.constant 0 : index
    %254 = vector.load %arg7[%c32_64, %c0_65] : memref<96x32xf32, #tpu.memory_space<vmem>>, vector<32x32xf32>
    %cst_66 = arith.constant dense<0.000000e+00> : vector<1x32xf32>
    %255 = tpu.matmul %248, %254, %cst_66 {dimension_numbers = #tpu.dot_dimension_numbers<[1], [0], [0], [1], [0, 0, 1, 1], [], []>} : vector<1x32xf32>, vector<32x32xf32>, vector<1x32xf32> -> vector<1x32xf32>
    %256 = arith.addf %253, %255 : vector<1x32xf32>
    %c64_67 = arith.constant 64 : index
    %c0_68 = arith.constant 0 : index
    %257 = vector.load %arg7[%c64_67, %c0_68] : memref<96x32xf32, #tpu.memory_space<vmem>>, vector<32x32xf32>
    %cst_69 = arith.constant dense<0.000000e+00> : vector<1x32xf32>
    %258 = tpu.matmul %3, %257, %cst_69 {dimension_numbers = #tpu.dot_dimension_numbers<[1], [0], [0], [1], [0, 0, 1, 1], [], []>} : vector<1x32xf32>, vector<32x32xf32>, vector<1x32xf32> -> vector<1x32xf32>
    %259 = arith.addf %256, %258 : vector<1x32xf32>
    %260 = arith.addf %259, %7 : vector<1x32xf32>
    %cst_70 = arith.constant 0.000000e+00 : f32
    %261 = vector.broadcast %cst_70 : f32 to vector<1x32xf32>
    %262 = arith.maximumf %260, %261 : vector<1x32xf32>
    %263 = vector.shape_cast %262 : vector<1x32xf32> to vector<1x1x32xf32>
    %c0_71 = arith.constant 0 : index
    %c0_72 = arith.constant 0 : index
    %c0_73 = arith.constant 0 : index
    %264 = vector.load %arg10[%c0_71, %c0_72, %c0_73] : memref<1x1x32xf32, #tpu.memory_space<vmem>>, vector<1x1x32xf32>
    tpu.vector_store %arg10[%c0_71, %c0_72, %c0_73], %263 {strides = array<i32>} : memref<1x1x32xf32, #tpu.memory_space<vmem>>, vector<1x1x32xf32>,
    return
  }
  func.func @transform_0(%arg0: i32) -> (i32, i32, i32) {
    %c0_i32 = arith.constant 0 : i32
    %c0_i32_0 = arith.constant 0 : i32
    %c0_i32_1 = arith.constant 0 : i32
    return %arg0, %c0_i32, %c0_i32_0 : i32, i32, i32
  }
  func.func @transform_1(%arg0: i32) -> (i32, i32, i32) {
    %c0_i32 = arith.constant 0 : i32
    %c0_i32_0 = arith.constant 0 : i32
    %c0_i32_1 = arith.constant 0 : i32
    return %arg0, %c0_i32, %c0_i32_0 : i32, i32, i32
  }
  func.func @transform_2(%arg0: i32) -> (i32, i32, i32) {
    %c0_i32 = arith.constant 0 : i32
    %c0_i32_0 = arith.constant 0 : i32
    %c0_i32_1 = arith.constant 0 : i32
    return %arg0, %c0_i32, %c0_i32_0 : i32, i32, i32
  }
  func.func @transform_3(%arg0: i32) -> (i32, i32) {
    %c0_i32 = arith.constant 0 : i32
    %c0_i32_0 = arith.constant 0 : i32
    %c0_i32_1 = arith.constant 0 : i32
    return %c0_i32, %c0_i32_0 : i32, i32
  }
  func.func @transform_4(%arg0: i32) -> (i32, i32) {
    %c0_i32 = arith.constant 0 : i32
    %c0_i32_0 = arith.constant 0 : i32
    %c0_i32_1 = arith.constant 0 : i32
    return %c0_i32, %c0_i32_0 : i32, i32
  }
  func.func @transform_5(%arg0: i32) -> (i32, i32) {
    %c0_i32 = arith.constant 0 : i32
    %c0_i32_0 = arith.constant 0 : i32
    %c0_i32_1 = arith.constant 0 : i32
    return %c0_i32, %c0_i32_0 : i32, i32
  }
  func.func @transform_6(%arg0: i32) -> (i32, i32) {
    %c0_i32 = arith.constant 0 : i32
    %c0_i32_0 = arith.constant 0 : i32
    %c0_i32_1 = arith.constant 0 : i32
    return %c0_i32, %c0_i32_0 : i32, i32
  }
  func.func @transform_7(%arg0: i32) -> (i32, i32) {
    %c0_i32 = arith.constant 0 : i32
    %c0_i32_0 = arith.constant 0 : i32
    %c0_i32_1 = arith.constant 0 : i32
    return %c0_i32, %c0_i32_0 : i32, i32
  }
  func.func @transform_8(%arg0: i32) -> (i32, i32) {
    %c0_i32 = arith.constant 0 : i32
    %c0_i32_0 = arith.constant 0 : i32
    %c0_i32_1 = arith.constant 0 : i32
    return %c0_i32, %c0_i32_0 : i32, i32
  }
  func.func @transform_9(%arg0: i32) -> (i32, i32, i32) {
    %c0_i32 = arith.constant 0 : i32
    %c0_i32_0 = arith.constant 0 : i32
    %c0_i32_1 = arith.constant 0 : i32
    return %arg0, %c0_i32, %c0_i32_0 : i32, i32, i32
  }
  func.func @transform_10(%arg0: i32) -> (i32, i32, i32) {
    %c0_i32 = arith.constant 0 : i32
    %c0_i32_0 = arith.constant 0 : i32
    %c0_i32_1 = arith.constant 0 : i32
    return %arg0, %c0_i32, %c0_i32_0 : i32, i32, i32
  }
}

</mosaic_0001>

<bundles_post_ra>
// kernel: tpu_custom_call.1
= control target key start
LH: loop header
LB: loop body
LE: loop exit
PB: predicated region body
PF: predicated region fallthrough
CT: control target
= control target key end

     0   :  { %s2059_s0 = inlined_call_operand.vmem [shape: f32[2,8,32], index: 0, kind: input, shape index: {}]   ;;  %s2060_s1 = inlined_call_operand.vmem [shape: f32[2,1,32], index: 1, kind: input, shape index: {}]   ;;  %s2061_s2 = inlined_call_operand.vmem [shape: f32[2,1,32], index: 2, kind: input, shape index: {}]   ;;  %s2062_s3 = inlined_call_operand.vmem [shape: f32[128,32], index: 3, kind: input, shape index: {}]   ;;  %s2063_s4 = inlined_call_operand.vmem [shape: f32[32,64], index: 4, kind: input, shape index: {}]   ;;  %s2064_s5 = inlined_call_operand.vmem [shape: f32[32,64], index: 5, kind: input, shape index: {}]   ;;  %s2065_s6 = inlined_call_operand.vmem [shape: f32[96,32], index: 6, kind: input, shape index: {}]   ;;  %s2066_s7 = inlined_call_operand.vmem [shape: f32[4,32], index: 7, kind: input, shape index: {}]   ;;  %s2067_s8 = inlined_call_operand.vmem [shape: f32[2,64], index: 8, kind: input, shape index: {}]   ;;  %s2068_s9 = inlined_call_operand.hbm [shape: f32[2,1,32], index: 9, kind: output, shape index: {0}]   ;;  %s2069_s10 = inlined_call_operand.hbm [shape: f32[2,8,32], index: 10, kind: output, shape index: {1}]  }
   0x1   :  { %2071 = sst [smem:[#allocation10_spill]] %s2059_s0 }
   0x2   :  { %2072 = sst [smem:[#allocation11_spill]] %s2060_s1 }
   0x3   :  { %2073 = sst [smem:[#allocation12_spill]] %s2061_s2 }
   0x4   :  { %16 = vsyncpa [#allocation3], 0 }
   0x5   :  { %18 = vsyncpa [#allocation3 + $0x1], 0 }
   0x6   :  { %19 = vsyncpa [#allocation5], 0 }
   0x7   :  { %21 = vsyncpa [#allocation5 + $0x1], 0  ;;  %s1700_s13 = smov 0   ;;  %s1702_s14 = smov 0  }
   0x8   :  { %s1704_s15 = smov 0   ;;  %s1706_s16 = smov 0  }
   0x9 LB: > { %2074 = sst [smem:[#allocation8_spill]] %s1635_s15  ;;  %s1721_s17 = sadd.s32 4294967295, %s1639_s16   ;;  %s1639_s16 = sphi %s1706_s16, %s2085_s16   ;;  %s1635_s15 = sphi %s1704_s15, %s2082_s15   ;;  %s1631_s14 = sphi %s1702_s14, %s2084_s14   ;;  %s1627_s13 = sphi %s1700_s13, %s2083_s13  }
   0xa   : > { %s1401_s18 = sadd.s32 4294967294, %s1639_s16   ;;  %s1725_s19 = sadd.s32 1, %s1639_s16  }
   0xb   : > { %s238_s20 = sadd.s32 1, %s1635_s15  ;;  %s235_s21 = ssub.s32 %s1639_s16, %s1725_s19 }
   0xc   : > { %p248_p0 = scmp.ne.s32.totalorder %s1635_s15, %s1631_s14  ;;  %p236_p1 = scmp.eq.s32.totalorder %s235_s21, 0 }
   0xd   : > { %p249_p2 = scmp.eq.s32.totalorder %s1721_s17, 1  ;;  %p254_p3 = scmp.ne.s32.totalorder %s1631_s14, %s1627_s13 }
   0xe   : > { %p255_p4 = scmp.eq.s32.totalorder %s1401_s18, 1  ;;  %p1404_p7 = scmp.ge.s32.totalorder %s1639_s16, 1 }
   0xf   : > { %s1736_s22 = scalar_select %p236_p1, %s1635_s15, %s238_s20  }
  0x10   : > { %p1738_p5 = por %p249_p2, %p248_p0  ;;  %p1742_p6 = por %p255_p4, %p254_p3 }
  0x11   : > { %2075 = sst [smem:[#allocation9_spill]] %s1736_s22  ;;  %p336_p8 = scmp.lt.s32.totalorder %s1639_s16, 3 }
  0x13   : > { %p337_p9 = pnand %p1404_p7, %p336_p8 }
  0x14   : > { %p383_p10 = scmp.lt.s32.totalorder (!%p337_p9), %s1721_s17, 1  ;;  %s2078_s1 = sld [smem:[#allocation11_spill]] (!%p337_p9) }
  0x15   : > { %340 = sbr.rel (%p337_p9) target bundleno = 4032 (0xfc0), region = 56  ;;  %s2079_s0 = sld [smem:[#allocation10_spill]] (!%p337_p9) }
  0x16   : > { %s2080_s2 = sld [smem:[#allocation12_spill]] (!%p337_p9)  ;;  %s1642_s22 = smov (!%p337_p9), 96  }
  0x17   : > { %s1644_s20 = smov (!%p337_p9), 32   ;;  %s1431_s27 = sshll.u32 (!%p337_p9), %s1721_s17, 3 }
  0x18   : > { %s1291_s18 = scalar_lea.hbm (!%p337_p9), %s2069_s10, %s1431_s27 }
  0x1a   : > { %v472_v0 = vld [vmem:[%s2062_s3 + $0x58] sm:$0xff]  ;;  %v471_v1 = vld [vmem:[%s2062_s3 + $0x50] sm:$0xff]  ;;  %v470_v5 = vld [vmem:[%s2062_s3 + $0x48] sm:$0xff]  ;;  %s384_s12 = scalar_select %p383_p10, %s1721_s17, 1  ;;  %vm422_vm0 = vcmask 261120   ;;  %v1641_v33 = vmov 0.0  }
  0x1b   : > { %v500_v2 = vld [vmem:[%s2062_s3 + $0x78] sm:$0xff]  ;;  %488 = vmatpush.msra.mxu2 %v472_v0  ;;  %v499_v6 = vld [vmem:[%s2062_s3 + $0x70] sm:$0xff]  ;;  %v498_v9 = vld [vmem:[%s2062_s3 + $0x68] sm:$0xff]  ;;  %vm535_vm1 = vcmask 7168  }
  0x1c   : > { %516 = vmatpush.msra.mxu3 %v500_v2  ;;  %v421_v3 = vld [vmem:[%s2062_s3 + $0x38] sm:$0xff]  ;;  %v420_v7 = vld [vmem:[%s2062_s3 + $0x30] sm:$0xff]  ;;  %v419_v10 = vld [vmem:[%s2062_s3 + $0x28] sm:$0xff]  ;;  %s1406_s28 = sshll.u32 %s384_s12, 3  ;;  %s1789_s11 = scalar_lea.vmem %s2078_s1, %s384_s12 }
  0x1d   : > { %v417_v4 = vld [vmem:[%s2062_s3 + $0x18] sm:$0xff]  ;;  %438 = vmatpush.msra.mxu0 %v421_v3  ;;  %v416_v8 = vld [vmem:[%s2062_s3 + $0x10] sm:$0xff]  ;;  %489 = vmatpush.msra.mxu2 %v471_v1  ;;  %v469_v11 = vld [vmem:[%s2062_s3 + $0x40] sm:$0xff]  ;;  %s386_s26 = scalar_lea.vmem %s2079_s0, %s1406_s28  ;;  %s1804_s30 = scalar_lea.vmem %s2080_s2, %s384_s12 }
  0x1e   : > { %461 = vmatpush.msra.mxu1 %v417_v4  ;;  %517 = vmatpush.msra.mxu3 %v499_v6  ;;  %v415_v12 = vld [vmem:[%s2062_s3 + $0x8] sm:$0xff]  ;;  %v497_v13 = vld [vmem:[%s2062_s3 + $0x60] sm:$0xff]  ;;  %v599_v21 = vld [vmem:[%s2064_s5 + $0x18] sm:$0xff]  ;;  %v1643_v4 = vmov 0  }
  0x1f   : > { %439 = vmatpush.msra.mxu0 %v420_v7  ;;  %490 = vmatpush.msra.mxu2 %v470_v5  ;;  %v1485_v14 = vld [vmem:[%s1789_s11] ss:$0 sm:$0xff]  ;;  %v571_v24 = vld [vmem:[%s2063_s4 + $0x18] sm:$0xff]  ;;  %v570_v25 = vld [vmem:[%s2063_s4 + $0x10] sm:$0xff] }
  0x20   : > { %462 = vmatpush.msra.mxu1 %v416_v8  ;;  %518 = vmatpush.msra.mxu3 %v498_v9  ;;  %v418_v15 = vld [vmem:[%s2062_s3 + $0x20] sm:$0xff]  ;;  %v598_v27 = vld [vmem:[%s2064_s5 + $0x10] sm:$0xff]  ;;  %v569_v28 = vld [vmem:[%s2063_s4 + $0x8] sm:$0xff] }
  0x21   : > { %v414_v16 = vld [vmem:[%s2062_s3] sm:$0xff]  ;;  %440 = vmatpush.msra.mxu0 %v419_v10  ;;  %491 = vmatpush.msra.mxu2 %v469_v11  ;;  %v597_v30 = vld [vmem:[%s2064_s5 + $0x8] sm:$0xff] }
  0x22   : > { %v393_v17 = vld [vmem:[%s386_s26] sm:$0xff]  ;;  %463 = vmatpush.msra.mxu1 %v415_v12  ;;  %519 = vmatpush.msra.mxu3 %v497_v13 }
  0x23   : > { %v1486_v18 = vld [vmem:[%s1804_s30] ss:$0 sm:$0xff]  ;;  %v410_v19 = vsub.f32 %v393_v17, %v1485_v14  ;;  %v405_v20 = vmul.f32 %v1485_v14, %v393_v17  ;;  %441 = vmatpush.msra.mxu0 %v418_v15  ;;  %685 = vmatpush.msrb.mxu2 %v599_v21  ;;  %v1488_v43 = vld [vmem:[%s2066_s7 + $0x2] ss:$0 sm:$0xff]  ;;  %v1852_v47 = vld [vmem:[%s2067_s8 + $0x1] sm:$0x1] }
  0x24   : > { %v412_v22 = vsub.f32 %v393_v17, %v1486_v18  ;;  %464 = vmatpush.msra.mxu1 %v414_v16  ;;  %v409_v23 = vmul.f32 %v1486_v18, %v393_v17  ;;  %v568_v31 = vld [vmem:[%s2063_s4] sm:$0xff]  ;;  %755 = vmatpush.msrb.mxu3 %v599_v21 }
  0x25   : > { %v411_v26 = vand.u32 2147483647, %v410_v19  ;;  %1408 = vmatmul.msk.f32.vlgmr.msra.gmra.mxu1 %vm422_vm0, %v405_v20  ;;  %588 = vmatpush.msrb.mxu0 %v571_v24  ;;  %v596_v32 = vld [vmem:[%s2064_s5] sm:$0xff] }
  0x26   : > { %v413_v29 = vand.u32 2147483647, %v412_v22  ;;  %1407 = vmatmul.msk.f32.vlgmr.msra.gmra.mxu0 %vm422_vm0, %v409_v23  ;;  %615 = vmatpush.msrb.mxu1 %v599_v21  ;;  %v1487_v40 = vld [vmem:[%s2066_s7] ss:$0 sm:$0xff]  ;;  %v1490_v58 = vld [vmem:[%s2066_s7 + $0x3] ss:$0 sm:$0xff] }
  0x27   : > { %1409 = vmatmul.msk.f32.vlgmr.msra.gmra.mxu2 %vm422_vm0, %v411_v26  ;;  %589 = vmatpush.msrb.mxu0 %v570_v25  ;;  %v1489_v50 = vld [vmem:[%s2067_s8] ss:$0 sm:$0xff] }
  0x28   : > { %1410 = vmatmul.msk.f32.vlgmr.msra.gmra.mxu3 %vm422_vm0, %v413_v29  ;;  %616 = vmatpush.msrb.mxu1 %v598_v27 }
  0x29   : > { %590 = vmatpush.msrb.mxu0 %v569_v28  ;;  %686 = vmatpush.msrb.mxu2 %v598_v27 }
  0x2a   : > { %617 = vmatpush.msrb.mxu1 %v597_v30  ;;  %756 = vmatpush.msrb.mxu3 %v598_v27 }
  0x2b   : > { %591 = vmatpush.msrb.mxu0 %v568_v31  ;;  %687 = vmatpush.msrb.mxu2 %v597_v30 }
  0x2c   : > { %618 = vmatpush.msrb.mxu1 %v596_v32  ;;  %757 = vmatpush.msrb.mxu3 %v597_v30 }
  0x2d   : > { %619 = vmatmul.f32.vlgmr.msrb.gmra.mxu1 %v1641_v33  ;;  %688 = vmatpush.msrb.mxu2 %v596_v32 }
  0x2e   : > { %1411 = vmatmul.msk.f32.vlgmr.msrb.gmra.mxu0 %vm422_vm0, %v393_v17  ;;  %758 = vmatpush.msrb.mxu3 %v596_v32 }
  0x2f   : > { %825 = vmatpush.msra.mxu0 %v599_v21  ;;  %895 = vmatpush.msra.mxu1 %v599_v21 }
  0x30   : > { %965 = vmatpush.msra.mxu2 %v599_v21  ;;  %1035 = vmatpush.msra.mxu3 %v599_v21 }
  0x31   : > { %826 = vmatpush.msra.mxu0 %v598_v27  ;;  %896 = vmatpush.msra.mxu1 %v598_v27 }
  0x32   : > { %966 = vmatpush.msra.mxu2 %v598_v27  ;;  %1036 = vmatpush.msra.mxu3 %v598_v27 }
  0x33   : > { %827 = vmatpush.msra.mxu0 %v597_v30  ;;  %897 = vmatpush.msra.mxu1 %v597_v30 }
  0x34   : > { %967 = vmatpush.msra.mxu2 %v597_v30  ;;  %1037 = vmatpush.msra.mxu3 %v597_v30 }
  0x35   : > { %828 = vmatpush.msra.mxu0 %v596_v32  ;;  %898 = vmatpush.msra.mxu1 %v596_v32 }
  0x36   : > { %968 = vmatpush.msra.mxu2 %v596_v32  ;;  %1038 = vmatpush.msra.mxu3 %v596_v32 }
  0x37   : > { %1105 = vmatpush.msrb.mxu0 %v599_v21  ;;  %1482 = vset.pattern.permute.xlu1 %v1643_v4 }
  0x38   : > { %1483 = vset.pattern.permute.xlu2 %v1643_v4  ;;  %1484 = vset.pattern.permute.xlu0 %v1643_v4 }
  0x39   : > { %1106 = vmatpush.msrb.mxu0 %v598_v27 }
  0x3b   : > { %1107 = vmatpush.msrb.mxu0 %v597_v30 }
  0x3d   : > { %1108 = vmatpush.msrb.mxu0 %v596_v32 }
  0xa2   : > { %v466_v35 = vpop.f32.mrf.mxu1 }
  0xa3   : > { %v443_v34 = vpop.f32.mrf.mxu0 }
  0xa4   : > { %v467_v36 = vadd.f32 %v466_v35, %v443_v34 }
  0xaa   : > { %v493_v37 = vpop.f32.mrf.mxu2  ;;  %v620_v48 = vpop.f32.mrf.mxu1 }
  0xab   : > { %v496_v38 = vadd.f32 %v493_v37, %v467_v36  ;;  %v521_v39 = vpop.f32.mrf.mxu3  ;;  %v621_v49 = vadd.f32 %v620_v48, %v1852_v47  ;;  %v593_v51 = vpop.f32.mrf.mxu0 }
  0xac   : > { %v1859_v52 = vadd.f32 %v1489_v50, %v593_v51 }
  0xad   : > { %v524_v41 = vadd.f32 %v521_v39, %v496_v38 }
  0xae   : > { %v623_v53 = vadd.f32 %v621_v49, %v1859_v52 }
  0xaf   : > { %v526_v42 = vadd.f32 %v1487_v40, %v524_v41 }
  0xb0   : > { %v1412_v54 = vmul.f32 -1.442695, %v623_v53 }
  0xb1   : > { %1491 = vtanh.f32 %v526_v42 }
  0xb2   : > { %1493 = vpow2.f32 %v1412_v54 }
  0xb7   : > { %v1492_v44 = vpop.eup %1491 }
  0xb8   : > { %v529_v45 = vmul.f32 %v1492_v44, %v1488_v43  ;;  %v1494_v55 = vpop.eup %1493 }
  0xb9   : > { %v627_v56 = vadd.f32 1.0, %v1494_v55 }
  0xba   : > { %v530_v46 = vsel %vm422_vm0, %v529_v45, 0.0 }
  0xbb   : > { %531 = vadd.xlane.f32.xlu0 %v530_v46  ;;  %1495 = vrcp.f32 %v627_v56  ;;  %vm633_vm2 = vweird.f32 %v627_v56  ;;  %v639_v6 = vand.u32 2147483648, %v627_v56  ;;  %v637_v9 = vand.u32 2147483647, %v627_v56 }
  0xbd   : > { %v640_v11 = vor.u32 1.1754944e-38, %v639_v6  ;;  %vm638_vm5 = vcmp.eq.f32.partialorder %v637_v9, 8.507059e+37 }
  0xc1   : > { %v1496_v57 = vpop.eup %1495 }
  0xc2   : > { %v629_v60 = vmul.f32 %v1496_v57, %v627_v56  ;;  %vm634_vm3 = vweird.f32 %v1496_v57 }
  0xc3   : > { %vm635_vm4 = vmor %vm633_vm2, %vm634_vm3  ;;  %vm1157_vm3 = vcmask 1040384  }
  0xc4   : > { %v630_v0 = vsub.f32 1.0, %v629_v60 }
  0xc6   : > { %v631_v3 = vmul.f32 %v1496_v57, %v630_v0 }
  0xc8   : > { %v632_v8 = vadd.f32 %v1496_v57, %v631_v3 }
  0xca   : > { %v636_v13 = vsel %vm635_vm4, %v1496_v57, %v632_v8  ;;  %vm1159_vm4 = vcmask 1041408  }
  0xcb   : > { %v641_v15 = vsel %vm638_vm5, %v640_v11, %v636_v13 }
  0xcf   : > { %644 = vrot.lane.b32.xlu0 %v621_v49, %s1642_s22 }
 0x12e   : > { %v532_v59 = vpop.xlane.xlu0 %531 }
 0x12f   : > { %v534_v61 = vadd.f32 %v1490_v58, %v532_v59 }
 0x131   : > { %v536_v62 = vsel %vm535_vm1, %v534_v61, -inf }
 0x132   : > { %v537_v63 = vrot.slane %v536_v62, 4 }
 0x134   : > { %v538_v1 = vmax.f32 %v536_v62, %v537_v63 }
 0x136   : > { %v539_v2 = vrot.slane %v538_v1, 2 }
 0x138   : > { %v540_v5 = vmax.f32 %v538_v1, %v539_v2 }
 0x13a   : > { %v541_v7 = vrot.slane %v540_v5, 1 }
 0x13c   : > { %v542_v10 = vmax.f32 %v540_v5, %v541_v7 }
 0x13e   : > { %v543_v12 = vsub.f32 %v534_v61, %v542_v10 }
 0x140   : > { %v544_v14 = vmul.f32 1.442695, %v543_v12 }
 0x141   : > { %v645_v16 = vpop.permute.xlu0 %644 }
 0x142   : > { %1497 = vpow2.f32 %v544_v14  ;;  %v647_v17 = vmul.f32 %v645_v16, %v641_v15 }
 0x144   : > { %649 = vrot.lane.b32.xlu1 %v647_v17, %s1644_s20 }
 0x148   : > { %v1498_v18 = vpop.eup %1497 }
 0x149   : > { %v546_v19 = vsel %vm535_vm1, %v1498_v18, 0.0 }
 0x14a   : > { %v547_v20 = vrot.slane %v546_v19, 4 }
 0x14c   : > { %v548_v21 = vadd.f32 %v547_v20, %v546_v19 }
 0x14e   : > { %v549_v22 = vrot.slane %v548_v21, 2 }
 0x150   : > { %v550_v23 = vadd.f32 %v549_v22, %v548_v21 }
 0x152   : > { %v551_v24 = vrot.slane %v550_v23, 1 }
 0x154   : > { %v552_v25 = vadd.f32 %v551_v24, %v550_v23 }
 0x156   : > { %1499 = vrcp.f32 %v552_v25  ;;  %v564_v29 = vand.u32 2147483648, %v552_v25  ;;  %v562_v31 = vand.u32 2147483647, %v552_v25  ;;  %vm558_vm7 = vweird.f32 %v552_v25 }
 0x158   : > { %v565_v33 = vor.u32 1.1754944e-38, %v564_v29  ;;  %vm563_vm9 = vcmp.eq.f32.partialorder %v562_v31, 8.507059e+37 }
 0x15c   : > { %v1500_v26 = vpop.eup %1499 }
 0x15d   : > { %v554_v27 = vmul.f32 %v1500_v26, %v552_v25  ;;  %vm559_vm6 = vweird.f32 %v1500_v26 }
 0x15e   : > { %vm560_vm8 = vmor %vm558_vm7, %vm559_vm6 }
 0x15f   : > { %v555_v28 = vsub.f32 1.0, %v554_v27 }
 0x161   : > { %v556_v30 = vmul.f32 %v1500_v26, %v555_v28 }
 0x163   : > { %v557_v32 = vadd.f32 %v1500_v26, %v556_v30 }
 0x165   : > { %v561_v34 = vsel %vm560_vm8, %v1500_v26, %v557_v32 }
 0x166   : > { %v566_v35 = vsel %vm563_vm9, %v565_v33, %v561_v34  ;;  %vm1161_vm9 = vcmask 1042432  }
 0x167   : > { %v567_v36 = vmul.f32 %v1498_v18, %v566_v35 }
 0x169   : > { %656 = vperm.xlu1 %1482, %v567_v36   ;;  %v660_v37 = vsub.f32 1.0, %v567_v36 }
 0x16b   : > { %663 = vperm.xlu2 %1483, %v660_v37  }
 0x1b6   : > { %v650_v38 = vpop.permute.xlu1 %649 }
 0x1b7   : > { %v652_v39 = vadd.f32 %v650_v38, %v1859_v52 }
 0x1b9   : > { %1501 = vtanh.f32 %v652_v39 }
 0x1bf   : > { %v1502_v41 = vpop.eup %1501 }
 0x1c5   : > { %v1869_v40 = vpop.permute.xlu2 %663 }
 0x1c6   : > { %v666_v44 = vmul.f32 0.0, %v1869_v40 }
 0x1db   : > { %v1871_v42 = vpop.permute.xlu1 %656 }
 0x1dc   : > { %v659_v43 = vmul.f32 %v1502_v41, %v1871_v42 }
 0x1de   : > { %v1875_v45 = vadd.f32 %v666_v44, %v659_v43 }
 0x1e0   : > { %669 = vrot.lane.b32.xlu2 %v1875_v45, %s1642_s22  ;;  %v727_v46 = vrot.slane %v1875_v45, 7 }
 0x1e8   : > { %728 = vrot.lane.b32.xlu2 %v727_v46, %s1642_s22 }
 0x23a   : > { %v670_v48 = vpop.permute.xlu2 %669 }
 0x23b   : > { %1413 = vmatmul.msk.f32.vlgmr.msrb.gmra.mxu2 %vm422_vm0, %v670_v48 }
 0x242   : > { %v729_v49 = vpop.permute.xlu2 %728 }
 0x243   : > { %v731_v50 = vmul.f32 %v729_v49, %v1869_v40 }
 0x245   : > { %733 = vrot.lane.b32.xlu2 %v731_v50, %s1644_s20 }
 0x29f   : > { %v734_v11 = vpop.permute.xlu2 %733 }
 0x2be   : > { %v690_v51 = vpop.f32.mrf.mxu2 }
 0x2bf   : > { %v691_v53 = vadd.f32 %v690_v51, %v1852_v47 }
 0x2c1   : > { %v694_v54 = vrot.slane %v691_v53, 7 }
 0x2c3   : > { %716 = vrot.lane.b32.xlu1 %v694_v54, %s1642_s22  ;;  %v696_v55 = vadd.f32 %v694_v54, %v1859_v52 }
 0x2c5   : > { %v1414_v56 = vmul.f32 -1.442695, %v696_v55 }
 0x2c7   : > { %1503 = vpow2.f32 %v1414_v56 }
 0x2cd   : > { %v1504_v57 = vpop.eup %1503 }
 0x2ce   : > { %v700_v58 = vadd.f32 1.0, %v1504_v57 }
 0x2d0   : > { %1505 = vrcp.f32 %v700_v58  ;;  %v712_v0 = vand.u32 2147483648, %v700_v58  ;;  %vm706_vm11 = vweird.f32 %v700_v58  ;;  %v710_v1 = vand.u32 2147483647, %v700_v58 }
 0x2d2   : > { %v713_v3 = vor.u32 1.1754944e-38, %v712_v0  ;;  %vm711_vm13 = vcmp.eq.f32.partialorder %v710_v1, 8.507059e+37 }
 0x2d6   : > { %v1506_v59 = vpop.eup %1505 }
 0x2d7   : > { %v702_v60 = vmul.f32 %v1506_v59, %v700_v58  ;;  %vm707_vm10 = vweird.f32 %v1506_v59 }
 0x2d8   : > { %vm708_vm12 = vmor %vm706_vm11, %vm707_vm10 }
 0x2d9   : > { %v703_v61 = vsub.f32 1.0, %v702_v60 }
 0x2db   : > { %v704_v62 = vmul.f32 %v1506_v59, %v703_v61 }
 0x2dd   : > { %v705_v63 = vadd.f32 %v1506_v59, %v704_v62 }
 0x2df   : > { %v709_v2 = vsel %vm708_vm12, %v1506_v59, %v705_v63 }
 0x2e0   : > { %v714_v5 = vsel %vm711_vm13, %v713_v3, %v709_v2 }
 0x335   : > { %v717_v4 = vpop.permute.xlu1 %716 }
 0x336   : > { %v719_v6 = vmul.f32 %v717_v4, %v714_v5 }
 0x338   : > { %721 = vrot.lane.b32.xlu1 %v719_v6, %s1644_s20 }
 0x3aa   : > { %v722_v7 = vpop.permute.xlu1 %721 }
 0x3ab   : > { %v724_v8 = vadd.f32 %v722_v7, %v1859_v52 }
 0x3ad   : > { %1507 = vtanh.f32 %v724_v8 }
 0x3b3   : > { %v1508_v9 = vpop.eup %1507 }
 0x3b4   : > { %v726_v10 = vmul.f32 %v1508_v9, %v1871_v42 }
 0x3b6   : > { %v736_v12 = vadd.f32 %v734_v11, %v726_v10 }
 0x3b8   : > { %v797_v13 = vrot.slane %v736_v12, 7  ;;  %v738_v14 = vrot.slane %v736_v12, 1  ;;  %v1158_v46 = vsel %vm1157_vm3, %v1875_v45, %v736_v12 }
 0x3ba   : > { %798 = vrot.lane.b32.xlu2 %v797_v13, %s1642_s22  ;;  %739 = vrot.lane.b32.xlu0 %v738_v14, %s1642_s22 }
 0x414   : > { %v799_v19 = vpop.permute.xlu2 %798 }
 0x415   : > { %v801_v20 = vmul.f32 %v799_v19, %v1869_v40 }
 0x42c   : > { %v740_v15 = vpop.permute.xlu0 %739 }
 0x42d   : > { %1415 = vmatmul.msk.f32.vlgmr.msrb.gmra.mxu3 %vm422_vm0, %v740_v15 }
 0x4b0   : > { %v760_v16 = vpop.f32.mrf.mxu3 }
 0x4b1   : > { %v761_v17 = vadd.f32 %v760_v16, %v1852_v47 }
 0x4b3   : > { %v764_v18 = vrot.slane %v761_v17, 6 }
 0x4b5   : > { %786 = vrot.lane.b32.xlu1 %v764_v18, %s1642_s22  ;;  %v766_v21 = vadd.f32 %v764_v18, %v1859_v52 }
 0x4b7   : > { %v1416_v22 = vmul.f32 -1.442695, %v766_v21 }
 0x4b9   : > { %1509 = vpow2.f32 %v1416_v22 }
 0x4bd   : > { %803 = vrot.lane.b32.xlu1 %v801_v20, %s1644_s20 }
 0x4bf   : > { %v1510_v23 = vpop.eup %1509 }
 0x4c0   : > { %v770_v24 = vadd.f32 1.0, %v1510_v23 }
 0x4c2   : > { %1511 = vrcp.f32 %v770_v24  ;;  %v782_v30 = vand.u32 2147483648, %v770_v24  ;;  %vm776_vm15 = vweird.f32 %v770_v24  ;;  %v780_v31 = vand.u32 2147483647, %v770_v24 }
 0x4c4   : > { %v783_v33 = vor.u32 1.1754944e-38, %v782_v30  ;;  %vm781_vm2 = vcmp.eq.f32.partialorder %v780_v31, 8.507059e+37 }
 0x4c8   : > { %v1512_v25 = vpop.eup %1511 }
 0x4c9   : > { %v772_v26 = vmul.f32 %v1512_v25, %v770_v24  ;;  %vm777_vm14 = vweird.f32 %v1512_v25 }
 0x4ca   : > { %vm778_vm1 = vmor %vm776_vm15, %vm777_vm14  ;;  %vm1163_vm14 = vcmask 1043456  }
 0x4cb   : > { %v773_v27 = vsub.f32 1.0, %v772_v26 }
 0x4cd   : > { %v774_v28 = vmul.f32 %v1512_v25, %v773_v27 }
 0x4cf   : > { %v775_v29 = vadd.f32 %v1512_v25, %v774_v28 }
 0x4d1   : > { %v779_v32 = vsel %vm778_vm1, %v1512_v25, %v775_v29 }
 0x4d2   : > { %v784_v35 = vsel %vm781_vm2, %v783_v33, %v779_v32 }
 0x527   : > { %v787_v34 = vpop.permute.xlu1 %786 }
 0x528   : > { %v789_v36 = vmul.f32 %v787_v34, %v784_v35 }
 0x52a   : > { %791 = vrot.lane.b32.xlu0 %v789_v36, %s1644_s20 }
 0x52f   : > { %v804_v43 = vpop.permute.xlu1 %803 }
 0x59c   : > { %v792_v37 = vpop.permute.xlu0 %791 }
 0x59d   : > { %v794_v38 = vadd.f32 %v792_v37, %v1859_v52 }
 0x59f   : > { %1513 = vtanh.f32 %v794_v38 }
 0x5a5   : > { %v1514_v39 = vpop.eup %1513 }
 0x5a6   : > { %v796_v41 = vmul.f32 %v1514_v39, %v1871_v42 }
 0x5a8   : > { %v806_v44 = vadd.f32 %v804_v43, %v796_v41 }
 0x5aa   : > { %v867_v48 = vrot.slane %v806_v44, 7  ;;  %v808_v49 = vrot.slane %v806_v44, 2  ;;  %v1160_v50 = vsel %vm1159_vm4, %v1158_v46, %v806_v44  ;;  %vm1165_vm4 = vcmask 1044480  }
 0x5ac   : > { %868 = vrot.lane.b32.xlu1 %v867_v48, %s1642_s22  ;;  %809 = vrot.lane.b32.xlu2 %v808_v49, %s1642_s22 }
 0x606   : > { %v810_v51 = vpop.permute.xlu2 %809 }
 0x607   : > { %1417 = vmatmul.msk.f32.vlgmr.msra.gmra.mxu0 %vm422_vm0, %v810_v51 }
 0x61e   : > { %v869_v56 = vpop.permute.xlu1 %868 }
 0x61f   : > { %v871_v57 = vmul.f32 %v869_v56, %v1869_v40 }
 0x684   : > { %v830_v53 = vpop.f32.mrf.mxu0 }
 0x685   : > { %v831_v54 = vadd.f32 %v830_v53, %v1852_v47 }
 0x687   : > { %v834_v55 = vrot.slane %v831_v54, 5 }
 0x689   : > { %856 = vrot.lane.b32.xlu0 %v834_v55, %s1642_s22  ;;  %v836_v45 = vadd.f32 %v834_v55, %v1859_v52 }
 0x68b   : > { %v1418_v58 = vmul.f32 -1.442695, %v836_v45 }
 0x68d   : > { %1515 = vpow2.f32 %v1418_v58 }
 0x691   : > { %873 = vrot.lane.b32.xlu0 %v871_v57, %s1644_s20 }
 0x693   : > { %v1516_v59 = vpop.eup %1515 }
 0x694   : > { %v840_v60 = vadd.f32 1.0, %v1516_v59 }
 0x696   : > { %1517 = vrcp.f32 %v840_v60  ;;  %v852_v2 = vand.u32 2147483648, %v840_v60  ;;  %vm846_vm6 = vweird.f32 %v840_v60  ;;  %v850_v3 = vand.u32 2147483647, %v840_v60 }
 0x698   : > { %v853_v5 = vor.u32 1.1754944e-38, %v852_v2  ;;  %vm851_vm8 = vcmp.eq.f32.partialorder %v850_v3, 8.507059e+37 }
 0x69c   : > { %v1518_v61 = vpop.eup %1517 }
 0x69d   : > { %v842_v62 = vmul.f32 %v1518_v61, %v840_v60  ;;  %vm847_vm5 = vweird.f32 %v1518_v61 }
 0x69e   : > { %vm848_vm7 = vmor %vm846_vm6, %vm847_vm5 }
 0x69f   : > { %v843_v63 = vsub.f32 1.0, %v842_v62 }
 0x6a1   : > { %v844_v0 = vmul.f32 %v1518_v61, %v843_v63 }
 0x6a3   : > { %v845_v1 = vadd.f32 %v1518_v61, %v844_v0 }
 0x6a5   : > { %v849_v4 = vsel %vm848_vm7, %v1518_v61, %v845_v1 }
 0x6a6   : > { %v854_v7 = vsel %vm851_vm8, %v853_v5, %v849_v4 }
 0x6fb   : > { %v857_v6 = vpop.permute.xlu0 %856 }
 0x6fc   : > { %v859_v8 = vmul.f32 %v857_v6, %v854_v7 }
 0x6fe   : > { %861 = vrot.lane.b32.xlu2 %v859_v8, %s1644_s20 }
 0x703   : > { %v874_v13 = vpop.permute.xlu0 %873 }
 0x758   : > { %v862_v9 = vpop.permute.xlu2 %861 }
 0x759   : > { %v864_v10 = vadd.f32 %v862_v9, %v1859_v52 }
 0x75b   : > { %1519 = vtanh.f32 %v864_v10 }
 0x761   : > { %v1520_v11 = vpop.eup %1519 }
 0x762   : > { %v866_v12 = vmul.f32 %v1520_v11, %v1871_v42 }
 0x764   : > { %v876_v14 = vadd.f32 %v874_v13, %v866_v12 }
 0x766   : > { %v937_v15 = vrot.slane %v876_v14, 7  ;;  %v878_v16 = vrot.slane %v876_v14, 3  ;;  %v1162_v17 = vsel %vm1161_vm9, %v1160_v50, %v876_v14  ;;  %vm1167_vm9 = vcmask 1045504  }
 0x768   : > { %938 = vrot.lane.b32.xlu0 %v937_v15, %s1642_s22  ;;  %879 = vrot.lane.b32.xlu1 %v878_v16, %s1642_s22 }
 0x7da   : > { %v880_v18 = vpop.permute.xlu1 %879  ;;  %v939_v22 = vpop.permute.xlu0 %938 }
 0x7db   : > { %1419 = vmatmul.msk.f32.vlgmr.msra.gmra.mxu1 %vm422_vm0, %v880_v18  ;;  %v941_v23 = vmul.f32 %v939_v22, %v1869_v40 }
 0x858   : > { %v900_v19 = vpop.f32.mrf.mxu1 }
 0x859   : > { %v901_v20 = vadd.f32 %v900_v19, %v1852_v47 }
 0x85b   : > { %v904_v21 = vrot.slane %v901_v20, 4 }
 0x85d   : > { %926 = vrot.lane.b32.xlu2 %v904_v21, %s1642_s22  ;;  %v906_v24 = vadd.f32 %v904_v21, %v1859_v52 }
 0x85f   : > { %v1420_v25 = vmul.f32 -1.442695, %v906_v24 }
 0x861   : > { %1521 = vpow2.f32 %v1420_v25 }
 0x865   : > { %943 = vrot.lane.b32.xlu2 %v941_v23, %s1644_s20 }
 0x867   : > { %v1522_v26 = vpop.eup %1521 }
 0x868   : > { %v910_v27 = vadd.f32 1.0, %v1522_v26 }
 0x86a   : > { %1523 = vrcp.f32 %v910_v27  ;;  %v922_v33 = vand.u32 2147483648, %v910_v27  ;;  %vm916_vm11 = vweird.f32 %v910_v27  ;;  %v920_v34 = vand.u32 2147483647, %v910_v27 }
 0x86c   : > { %v923_v36 = vor.u32 1.1754944e-38, %v922_v33  ;;  %vm921_vm13 = vcmp.eq.f32.partialorder %v920_v34, 8.507059e+37 }
 0x870   : > { %v1524_v28 = vpop.eup %1523 }
 0x871   : > { %v912_v29 = vmul.f32 %v1524_v28, %v910_v27  ;;  %vm917_vm10 = vweird.f32 %v1524_v28 }
 0x872   : > { %vm918_vm12 = vmor %vm916_vm11, %vm917_vm10 }
 0x873   : > { %v913_v30 = vsub.f32 1.0, %v912_v29 }
 0x875   : > { %v914_v31 = vmul.f32 %v1524_v28, %v913_v30 }
 0x877   : > { %v915_v32 = vadd.f32 %v1524_v28, %v914_v31 }
 0x879   : > { %v919_v35 = vsel %vm918_vm12, %v1524_v28, %v915_v32 }
 0x87a   : > { %v924_v38 = vsel %vm921_vm13, %v923_v36, %v919_v35 }
 0x8b7   : > { %v927_v37 = vpop.permute.xlu2 %926 }
 0x8b8   : > { %v929_v39 = vmul.f32 %v927_v37, %v924_v38 }
 0x8ba   : > { %931 = vrot.lane.b32.xlu1 %v929_v39, %s1644_s20 }
 0x8bf   : > { %v944_v48 = vpop.permute.xlu2 %943 }
 0x92c   : > { %v932_v41 = vpop.permute.xlu1 %931 }
 0x92d   : > { %v934_v43 = vadd.f32 %v932_v41, %v1859_v52 }
 0x92f   : > { %1525 = vtanh.f32 %v934_v43 }
 0x935   : > { %v1526_v44 = vpop.eup %1525 }
 0x936   : > { %v936_v46 = vmul.f32 %v1526_v44, %v1871_v42 }
 0x938   : > { %v946_v49 = vadd.f32 %v944_v48, %v936_v46 }
 0x93a   : > { %v1007_v50 = vrot.slane %v946_v49, 7  ;;  %v948_v51 = vrot.slane %v946_v49, 4  ;;  %v1164_v53 = vsel %vm1163_vm14, %v1162_v17, %v946_v49  ;;  %vm1169_vm14 = vcmask 1046528  }
 0x93c   : > { %1008 = vrot.lane.b32.xlu2 %v1007_v50, %s1642_s22  ;;  %949 = vrot.lane.b32.xlu0 %v948_v51, %s1642_s22 }
 0x996   : > { %v1009_v45 = vpop.permute.xlu2 %1008 }
 0x997   : > { %v1011_v58 = vmul.f32 %v1009_v45, %v1869_v40 }
 0x9ae   : > { %v950_v54 = vpop.permute.xlu0 %949 }
 0x9af   : > { %1421 = vmatmul.msk.f32.vlgmr.msra.gmra.mxu2 %vm422_vm0, %v950_v54 }
 0xa32   : > { %v970_v55 = vpop.f32.mrf.mxu2 }
 0xa33   : > { %v971_v56 = vadd.f32 %v970_v55, %v1852_v47 }
 0xa35   : > { %v974_v57 = vrot.slane %v971_v56, 3 }
 0xa37   : > { %996 = vrot.lane.b32.xlu1 %v974_v57, %s1642_s22  ;;  %v976_v59 = vadd.f32 %v974_v57, %v1859_v52 }
 0xa39   : > { %v1422_v60 = vmul.f32 -1.442695, %v976_v59 }
 0xa3b   : > { %1527 = vpow2.f32 %v1422_v60 }
 0xa3f   : > { %1013 = vrot.lane.b32.xlu1 %v1011_v58, %s1644_s20 }
 0xa41   : > { %v1528_v61 = vpop.eup %1527 }
 0xa42   : > { %v980_v62 = vadd.f32 1.0, %v1528_v61 }
 0xa44   : > { %1529 = vrcp.f32 %v980_v62  ;;  %v992_v4 = vand.u32 2147483648, %v980_v62  ;;  %vm986_vm1 = vweird.f32 %v980_v62  ;;  %v990_v5 = vand.u32 2147483647, %v980_v62 }
 0xa46   : > { %v993_v7 = vor.u32 1.1754944e-38, %v992_v4  ;;  %vm991_vm3 = vcmp.eq.f32.partialorder %v990_v5, 8.507059e+37 }
 0xa4a   : > { %v1530_v63 = vpop.eup %1529 }
 0xa4b   : > { %v982_v0 = vmul.f32 %v1530_v63, %v980_v62  ;;  %vm987_vm15 = vweird.f32 %v1530_v63 }
 0xa4c   : > { %vm988_vm2 = vmor %vm986_vm1, %vm987_vm15 }
 0xa4d   : > { %v983_v1 = vsub.f32 1.0, %v982_v0 }
 0xa4f   : > { %v984_v2 = vmul.f32 %v1530_v63, %v983_v1 }
 0xa51   : > { %v985_v3 = vadd.f32 %v1530_v63, %v984_v2 }
 0xa53   : > { %v989_v6 = vsel %vm988_vm2, %v1530_v63, %v985_v3 }
 0xa54   : > { %v994_v9 = vsel %vm991_vm3, %v993_v7, %v989_v6 }
 0xaa9   : > { %v997_v8 = vpop.permute.xlu1 %996 }
 0xaaa   : > { %v999_v10 = vmul.f32 %v997_v8, %v994_v9 }
 0xaac   : > { %1001 = vrot.lane.b32.xlu0 %v999_v10, %s1644_s20 }
 0xab1   : > { %v1014_v15 = vpop.permute.xlu1 %1013 }
 0xb1e   : > { %v1002_v11 = vpop.permute.xlu0 %1001 }
 0xb1f   : > { %v1004_v12 = vadd.f32 %v1002_v11, %v1859_v52  ;;  %v1179_v11 = vld [vmem:[%s2065_s6 + $0x18] sm:$0xff] }
 0xb20   : > { %1224 = vmatpush.msrb.mxu2 %v1179_v11 }
 0xb21   : > { %1531 = vtanh.f32 %v1004_v12  ;;  %v1178_v12 = vld [vmem:[%s2065_s6 + $0x10] sm:$0xff] }
 0xb22   : > { %1225 = vmatpush.msrb.mxu2 %v1178_v12 }
 0xb27   : > { %v1532_v13 = vpop.eup %1531 }
 0xb28   : > { %v1006_v14 = vmul.f32 %v1532_v13, %v1871_v42  ;;  %v1235_v13 = vld [vmem:[%s2065_s6 + $0x58] sm:$0xff] }
 0xb29   : > { %1250 = vmatpush.msrb.mxu3 %v1235_v13 }
 0xb2a   : > { %v1016_v16 = vadd.f32 %v1014_v15, %v1006_v14  ;;  %v1234_v14 = vld [vmem:[%s2065_s6 + $0x50] sm:$0xff]  ;;  %v1183_v15 = vld [vmem:[%s2065_s6 + $0x38] sm:$0xff] }
 0xb2b   : > { %1202 = vmatpush.msrb.mxu1 %v1183_v15  ;;  %1251 = vmatpush.msrb.mxu3 %v1234_v14 }
 0xb2c   : > { %v1077_v17 = vrot.slane %v1016_v16, 7  ;;  %v1018_v18 = vrot.slane %v1016_v16, 5  ;;  %v1166_v19 = vsel %vm1165_vm4, %v1164_v53, %v1016_v16  ;;  %v1177_v16 = vld [vmem:[%s2065_s6 + $0x8] sm:$0xff] }
 0xb2d   : > { %1226 = vmatpush.msrb.mxu2 %v1177_v16 }
 0xb2e   : > { %1078 = vrot.lane.b32.xlu1 %v1077_v17, %s1642_s22  ;;  %1019 = vrot.lane.b32.xlu2 %v1018_v18, %s1642_s22  ;;  %v1233_v17 = vld [vmem:[%s2065_s6 + $0x48] sm:$0xff]  ;;  %v1182_v18 = vld [vmem:[%s2065_s6 + $0x30] sm:$0xff] }
 0xb2f   : > { %1203 = vmatpush.msrb.mxu1 %v1182_v18  ;;  %1252 = vmatpush.msrb.mxu3 %v1233_v17 }
 0xb88   : > { %v1020_v20 = vpop.permute.xlu2 %1019 }
 0xb89   : > { %1423 = vmatmul.msk.f32.vlgmr.msra.gmra.mxu3 %vm422_vm0, %v1020_v20  ;;  %v1176_v20 = vld [vmem:[%s2065_s6] sm:$0xff] }
 0xb8a   : > { %1227 = vmatpush.msrb.mxu2 %v1176_v20 }
 0xba0   : > { %v1079_v24 = vpop.permute.xlu1 %1078 }
 0xba1   : > { %v1081_v25 = vmul.f32 %v1079_v24, %v1869_v40  ;;  %v1180_v24 = vld [vmem:[%s2065_s6 + $0x20] sm:$0xff] }
 0xc0c   : > { %v1040_v21 = vpop.f32.mrf.mxu3 }
 0xc0d   : > { %v1041_v22 = vadd.f32 %v1040_v21, %v1852_v47  ;;  %v1232_v21 = vld [vmem:[%s2065_s6 + $0x40] sm:$0xff] }
 0xc0e   : > { %1253 = vmatpush.msrb.mxu3 %v1232_v21 }
 0xc0f   : > { %v1044_v23 = vrot.slane %v1041_v22, 2  ;;  %v394_v22 = vld [vmem:[%s1789_s11] sm:$0x1]  ;;  %s2003_s11 = sand.u32 1, %s1631_s14  }
 0xc10   : > { %1429 = vmatmul.msk.f32.vlgmr.msrb.gmra.mxu3 %vm422_vm0, %v394_v22  ;;  %s1268_s12 = scalar_lea.sflag [#allocation5], %s2003_s11 }
 0xc11   : > { %1066 = vrot.lane.b32.xlu0 %v1044_v23, %s1642_s22  ;;  %v1046_v26 = vadd.f32 %v1044_v23, %v1859_v52  ;;  %v395_v23 = vld [vmem:[%s1804_s30] sm:$0x1]  ;;  %s1405_s30 = sshll.u32 %s2003_s11, 3 }
 0xc12   : > { %1428 = vmatmul.msk.f32.vlgmr.msrb.gmra.mxu2 %vm422_vm0, %v395_v23  ;;  %s382_s26 = scalar_lea.vmem [#allocation4], %s1405_s30  ;;  %s1565_s30 = scalar_lea.hbm %s2069_s10, 16 }
 0xc13   : > { %v1424_v27 = vmul.f32 -1.442695, %v1046_v26  ;;  %s1293_s28 = sshll.u32 %s382_s26, 4  ;;  %s1294_s28 = int_to_ptr.vmem [resolvable:$true] %s1293_s28 }
 0xc15   : > { %1533 = vpow2.f32 %v1424_v27 }
 0xc19   : > { %1083 = vrot.lane.b32.xlu0 %v1081_v25, %s1644_s20 }
 0xc1b   : > { %v1534_v28 = vpop.eup %1533 }
 0xc1c   : > { %v1050_v29 = vadd.f32 1.0, %v1534_v28 }
 0xc1e   : > { %1535 = vrcp.f32 %v1050_v29  ;;  %v1062_v35 = vand.u32 2147483648, %v1050_v29  ;;  %vm1056_vm6 = vweird.f32 %v1050_v29  ;;  %v1060_v36 = vand.u32 2147483647, %v1050_v29 }
 0xc20   : > { %v1063_v38 = vor.u32 1.1754944e-38, %v1062_v35  ;;  %vm1061_vm8 = vcmp.eq.f32.partialorder %v1060_v36, 8.507059e+37 }
 0xc24   : > { %v1536_v30 = vpop.eup %1535 }
 0xc25   : > { %v1052_v31 = vmul.f32 %v1536_v30, %v1050_v29  ;;  %vm1057_vm5 = vweird.f32 %v1536_v30 }
 0xc26   : > { %vm1058_vm7 = vmor %vm1056_vm6, %vm1057_vm5 }
 0xc27   : > { %v1053_v32 = vsub.f32 1.0, %v1052_v31 }
 0xc29   : > { %v1054_v33 = vmul.f32 %v1536_v30, %v1053_v32 }
 0xc2b   : > { %v1055_v34 = vadd.f32 %v1536_v30, %v1054_v33 }
 0xc2d   : > { %v1059_v37 = vsel %vm1058_vm7, %v1536_v30, %v1055_v34 }
 0xc2e   : > { %v1064_v41 = vsel %vm1061_vm8, %v1063_v38, %v1059_v37 }
 0xc83   : > { %v1067_v39 = vpop.permute.xlu0 %1066 }
 0xc84   : > { %v1069_v43 = vmul.f32 %v1067_v39, %v1064_v41 }
 0xc86   : > { %1071 = vrot.lane.b32.xlu2 %v1069_v43, %s1644_s20 }
 0xc8b   : > { %v1084_v50 = vpop.permute.xlu0 %1083 }
 0xce0   : > { %v1072_v44 = vpop.permute.xlu2 %1071 }
 0xce1   : > { %v1074_v46 = vadd.f32 %v1072_v44, %v1859_v52 }
 0xce3   : > { %1537 = vtanh.f32 %v1074_v46 }
 0xce9   : > { %v1538_v48 = vpop.eup %1537 }
 0xcea   : > { %v1076_v49 = vmul.f32 %v1538_v48, %v1871_v42 }
 0xcec   : > { %v1086_v51 = vadd.f32 %v1084_v50, %v1076_v49 }
 0xcee   : > { %v1147_v53 = vrot.slane %v1086_v51, 7  ;;  %v1088_v54 = vrot.slane %v1086_v51, 6  ;;  %v1946_v55 = vsel %vm1167_vm9, %v1166_v19, %v1086_v51  ;;  %v1181_v19 = vld [vmem:[%s2065_s6 + $0x28] sm:$0xff] }
 0xcef   : > { %1204 = vmatpush.msrb.mxu1 %v1181_v19 }
 0xcf0   : > { %1148 = vrot.lane.b32.xlu0 %v1147_v53, %s1642_s22  ;;  %1089 = vrot.lane.b32.xlu1 %v1088_v54, %s1642_s22 }
 0xcf1   : > { %1205 = vmatpush.msrb.mxu1 %v1180_v24 }
 0xd62   : > { %v1090_v56 = vpop.permute.xlu1 %1089  ;;  %v1149_v59 = vpop.permute.xlu0 %1148 }
 0xd63   : > { %1425 = vmatmul.msk.f32.vlgmr.msrb.gmra.mxu0 %vm422_vm0, %v1090_v56  ;;  %v1151_v60 = vmul.f32 %v1149_v59, %v1869_v40 }
 0xde0   : > { %v1110_v57 = vpop.f32.mrf.mxu0 }
 0xde1   : > { %v1111_v45 = vadd.f32 %v1110_v57, %v1852_v47 }
 0xde3   : > { %v1114_v58 = vrot.slane %v1111_v45, 1 }
 0xde5   : > { %1136 = vrot.lane.b32.xlu2 %v1114_v58, %s1642_s22  ;;  %v1116_v61 = vadd.f32 %v1114_v58, %v1859_v52 }
 0xde7   : > { %v1426_v62 = vmul.f32 -1.442695, %v1116_v61 }
 0xde9   : > { %1539 = vpow2.f32 %v1426_v62 }
 0xded   : > { %1153 = vrot.lane.b32.xlu2 %v1151_v60, %s1644_s20 }
 0xdef   : > { %v1540_v63 = vpop.eup %1539 }
 0xdf0   : > { %v1120_v0 = vadd.f32 1.0, %v1540_v63 }
 0xdf2   : > { %1541 = vrcp.f32 %v1120_v0  ;;  %v1132_v5 = vand.u32 2147483648, %v1120_v0  ;;  %vm1126_vm11 = vweird.f32 %v1120_v0  ;;  %v1130_v6 = vand.u32 2147483647, %v1120_v0 }
 0xdf4   : > { %v1133_v7 = vor.u32 1.1754944e-38, %v1132_v5  ;;  %vm1131_vm13 = vcmp.eq.f32.partialorder %v1130_v6, 8.507059e+37 }
 0xdf8   : > { %v1542_v1 = vpop.eup %1541 }
 0xdf9   : > { %v1122_v2 = vmul.f32 %v1542_v1, %v1120_v0  ;;  %vm1127_vm10 = vweird.f32 %v1542_v1 }
 0xdfa   : > { %vm1128_vm12 = vmor %vm1126_vm11, %vm1127_vm10 }
 0xdfb   : > { %v1123_v3 = vsub.f32 1.0, %v1122_v2 }
 0xdfd   : > { %v1124_v4 = vmul.f32 %v1542_v1, %v1123_v3 }
 0xdff   : > { %v1125_v47 = vadd.f32 %v1542_v1, %v1124_v4 }
 0xe01   : > { %v1129_v40 = vsel %vm1128_vm12, %v1542_v1, %v1125_v47 }
 0xe02   : > { %v1134_v9 = vsel %vm1131_vm13, %v1133_v7, %v1129_v40 }
 0xe3f   : > { %v1137_v8 = vpop.permute.xlu2 %1136 }
 0xe40   : > { %v1139_v10 = vmul.f32 %v1137_v8, %v1134_v9 }
 0xe42   : > { %1141 = vrot.lane.b32.xlu1 %v1139_v10, %s1644_s20 }
 0xe47   : > { %v1154_v29 = vpop.permute.xlu2 %1153 }
 0xeb4   : > { %v1142_v25 = vpop.permute.xlu1 %1141 }
 0xeb5   : > { %v1144_v26 = vadd.f32 %v1142_v25, %v1859_v52 }
 0xeb7   : > { %1543 = vtanh.f32 %v1144_v26 }
 0xebd   : > { %v1544_v27 = vpop.eup %1543 }
 0xebe   : > { %v1146_v28 = vmul.f32 %v1544_v27, %v1871_v42 }
 0xec0   : > { %v1156_v30 = vadd.f32 %v1154_v29, %v1146_v28 }
 0xec2   : > { %v1170_v31 = vsel %vm1169_vm14, %v1946_v55, %v1156_v30  ;;  %v1185_v32 = vrot.slane %v1156_v30, 7 }
 0xec3   : > { %1172 = vrot.lane.b32.xlu1 %v1170_v31, %s1642_s22 }
 0xec4   : > { %1186 = vrot.lane.b32.xlu0 %v1185_v32, %s1642_s22  ;;  %s1295_s22 = sshll.u32 %s1291_s18, 4  ;;  %s1296_s22 = int_to_ptr.hbm [resolvable:$true] %s1295_s22 }
 0xec5   : > { %s1559_s1 = sshra.s32 %s1296_s22, 4  ;;  %s1560_s1 = int_to_ptr.hbm [resolvable:$true] %s1559_s1 }
 0xec6   : > { %s1561_s20 = scalar_lea.hbm %s1560_s1, 8  ;;  %p1566_p0 = scmp.lt.s32.totalorder %s1560_s1, %s2069_s10 }
 0xec7   : > { %p1562_p11 = scmp.ne.s32.totalorder %s1560_s1, %s1561_s20  ;;  %p1567_p1 = scmp.lt.s32.totalorder %s1565_s30, %s1561_s20 }
 0xec9   : > { %p1563_p12 = pnand %p1562_p11, %p1738_p5  ;;  %p1568_p2 = por %p1567_p1, %p1566_p0 }
 0xecb   : > { %p1564_p13 = pneg %p1563_p12 }
 0xecd   : > { %p1569_p3 = pnand %p1568_p2, %p1564_p13 }
 0xf35   : > { %v1173_v52 = vpop.permute.xlu1 %1172 }
 0xf36   : > { %1175 = vst.msk [vmem:[%s382_s26] sm:$0xff] %vm422_vm0, %v1173_v52  ;;  %v1187_v42 = vpop.permute.xlu0 %1186 }
 0xf37   : > { %1427 = vmatmul.msk.f32.vlgmr.msrb.gmra.mxu1 %vm422_vm0, %v1187_v42 }
 0xf38   : > { %1572 = shalt.err (!%p1569_p3)
}
 0xf39   : > { %1435 = dma.vmem_to_hbm [thread:$0]  (%p1738_p5), %s1294_s28, 128, %s1296_s22, %s1268_s12   ;;  %v1229_v33 = vpop.f32.mrf.mxu2  ;;  %v1255_v35 = vpop.f32.mrf.mxu3  ;;  %v397_v37 = vld [vmem:[%s2066_s7 + $0x1] sm:$0x1]  ;;  %vm1261_vm0 = vcmask 253952  }
 0xf3a   : > { %s1277_s29 = scalar_lea.hbm %s2068_s9, %s1721_s17  ;;  %s375_s15 = scalar_lea.vmem [#allocation2], %s2003_s11 }
 0xf3b   : > { %s1279_s18 = sshll.u32 %s375_s15, 4  ;;  %s1281_s1 = sshll.u32 %s1277_s29, 4  ;;  %s1280_s18 = int_to_ptr.vmem [resolvable:$true] %s1279_s18  ;;  %s1282_s1 = int_to_ptr.hbm [resolvable:$true] %s1281_s1 }
 0xf3c   : > { %s1264_s28 = scalar_lea.sflag [#allocation3], %s2003_s11  ;;  %s1587_s22 = sshra.s32 %s1282_s1, 4  ;;  %s1588_s22 = int_to_ptr.hbm [resolvable:$true] %s1587_s22 }
 0xf3d   : > { %s1589_s12 = scalar_lea.hbm %s1588_s22, 1  ;;  %s1593_s21 = scalar_lea.hbm %s2068_s9, 2 }
 0xf3e   : > { %p1590_p4 = scmp.ne.s32.totalorder %s1588_s22, %s1589_s12  ;;  %p1594_p9 = scmp.lt.s32.totalorder %s1588_s22, %s2068_s9 }
 0xf3f   : > { %p1595_p10 = scmp.lt.s32.totalorder %s1593_s21, %s1589_s12 }
 0xf40   : > { %p1591_p7 = pnand %p1590_p4, %p1738_p5 }
 0xf41   : > { %p1596_p11 = por %p1595_p10, %p1594_p9 }
 0xf42   : > { %p1592_p8 = pneg %p1591_p7 }
 0xf44   : > { %p1597_p12 = pnand %p1596_p11, %p1592_p8 }
 0xfb4   : > { %v1207_v34 = vpop.f32.mrf.mxu1 }
 0xfb5   : > { %v1230_v36 = vadd.f32 %v1229_v33, %v1207_v34 }
 0xfb7   : > { %v1258_v38 = vadd.f32 %v1255_v35, %v1230_v36 }
 0xfb9   : > { %v1259_v39 = vadd.f32 %v1258_v38, %v397_v37 }
 0xfbb   : > { %v1260_v41 = vmax.f32 %v1259_v39, 0.0 }
 0xfbd   : > { %1262 = vst.msk [vmem:[%s375_s15] sm:$0x1] %vm1261_vm0, %v1260_v41 }
 0xfbe   : > { %1600 = shalt.err (!%p1597_p12)
}
 0xfbf   : > { %1434 = dma.vmem_to_hbm [thread:$0]  (%p1738_p5), %s1280_s18, 16, %s1282_s1, %s1264_s28  }
 0xfc0 PF: > { %p1445_p13 = scmp.ge.s32.totalorder %s1639_s16, 2  ;;  %s1307_s11 = sand.u32 1, %s1627_s13  }
 0xfc1   : > { %s1308_s26 = scalar_lea.sflag [#allocation3], %s1307_s11 }
 0xfc2   : > { %p1439_p0 = pnand %p1445_p13, %p1742_p6 }
 0xfc4   : > { %p1440_p1 = pneg %p1439_p0 }
 0xfc6   : > { %1618 = dma.done.wait (%p1440_p1), %s1308_s26, 16  }
 0xfc7   : > { %1620 = vsyncadd (%p1440_p1), %s1308_s26, 4294967280  ;;  %s1317_s27 = scalar_lea.sflag [#allocation5], %s1307_s11 }
 0xfc8   : > { %1622 = dma.done.wait (%p1440_p1), %s1317_s27, 128  }
 0xfc9   : > { %1624 = vsyncadd (%p1440_p1), %s1317_s27, 4294967168  ;;  %s2081_s29 = sld [smem:[#allocation8_spill]]  ;;  %p24_p5 = scmp.ge.s32.totalorder %s1725_s19, 4  }
 0xfca   : > { %s2082_s15 = sld [smem:[#allocation9_spill]]  ;;  %s2083_s13 = smov %s1631_s14 }
 0xfcb   : > { %s2085_s16 = smov %s1725_s19  ;;  %26 = sbr.rel (!%p24_p5) target bundleno = 9 (0x9), region = 114 }
 0xfcf   : > { %s2084_s14 = smov %s2081_s29 }
 0xfd0   :  { %1323 = vsyncpa [#allocation3], 1 }
 0xfd1   :  { %1325 = vsyncpa [#allocation3 + $0x1], 1 }
 0xfd2   :  { %1326 = vsyncpa [#allocation5], 1 }
 0xfd3   :  { %1328 = vsyncpa [#allocation5 + $0x1], 1 }

</bundles_post_ra>
